<compile_context>
chip_gen: v7x
topology: tpu7x:2x2x1
jax: 0.10.0
libtpu: 0.0.40
codegen_flags: <defaults>
</compile_context>

<pallas_src>
import functools

import jax
import jax.numpy as jnp
from jax.experimental import pallas as pl
from jax.experimental.pallas import tpu as pltpu

LN_EPS = 1e-5
LANE = 128


def _round_up(x, m):
    return (x + m - 1) // m * m


def _feature_extractor_kernel(x_ref, w1_ref, b1_ref, g1_ref, be1_ref,
                              w2_ref, b2_ref, g2_ref, be2_ref, o_ref,
                              *, hidden_dim, matmul_dtype):
    inv_n = 1.0 / float(hidden_dim)

    def linear_ln_relu(a, w_ref, b_ref, g_ref, be_ref):
        # MXU matmul: bf16 inputs, f32 accumulation.
        h = jnp.dot(a.astype(matmul_dtype), w_ref[...],
                    preferred_element_type=jnp.float32) + b_ref[...]
        # One-pass LayerNorm stats. Padded lanes of h are exactly zero by construction,
        # so full-lane sums equal sums over the true hidden_dim columns.
        mu = jnp.sum(h, axis=-1, keepdims=True) * inv_n
        ms = jnp.sum(h * h, axis=-1, keepdims=True) * inv_n
        var = jnp.maximum(ms - mu * mu, 0.0)
        h = (h - mu) * jax.lax.rsqrt(var + LN_EPS) * g_ref[...] + be_ref[...]
        # ReLU; Dropout(0.3) is identity in eval mode.
        return jnp.maximum(h, 0.0)

    h = linear_ln_relu(x_ref[...], w1_ref, b1_ref, g1_ref, be1_ref)
    y = linear_ln_relu(h, w2_ref, b2_ref, g2_ref, be2_ref)
    o_ref[...] = y.astype(o_ref.dtype)


def feature_extractor(x, params, *, matmul_dtype=jnp.bfloat16, block_m=128):
    """x: (batch, input_dim) float32. params: dict with (in, out)-layout weights."""
    batch, input_dim = x.shape
    hidden_dim = params["w1"].shape[1]

    din_p = _round_up(input_dim, LANE)
    h_p = _round_up(hidden_dim, LANE)
    tm = min(block_m, _round_up(batch, 8))       # sublane-aligned batch tile
    batch_p = _round_up(batch, tm)

    def pad2(a, rows, cols):
        return jnp.pad(a, ((0, rows - a.shape[0]), (0, cols - a.shape[1])))

    x_p = pad2(x, batch_p, din_p)
    w1 = pad2(params["w1"], din_p, h_p).astype(matmul_dtype)
    w2 = pad2(params["w2"], h_p, h_p).astype(matmul_dtype)
    b1 = pad2(params["b1"], 1, h_p)
    b2 = pad2(params["b2"], 1, h_p)
    g1 = pad2(params["ln1_g"], 1, h_p)
    g2 = pad2(params["ln2_g"], 1, h_p)
    be1 = pad2(params["ln1_b"], 1, h_p)
    be2 = pad2(params["ln2_b"], 1, h_p)

    def resident(shape):
        return pl.BlockSpec(shape, lambda i: (0, 0))

    kernel = functools.partial(_feature_extractor_kernel,
                               hidden_dim=hidden_dim, matmul_dtype=matmul_dtype)

    out = pl.pallas_call(
        kernel,
        out_shape=jax.ShapeDtypeStruct((batch_p, h_p), jnp.float32),
        grid=(batch_p // tm,),
        in_specs=[
            pl.BlockSpec((tm, din_p), lambda i: (i, 0)),   # x tile (pipelined over batch)
            resident((din_p, h_p)),                        # w1 (VMEM-resident)
            resident((1, h_p)), resident((1, h_p)), resident((1, h_p)),
            resident((h_p, h_p)),                          # w2 (VMEM-resident)
            resident((1, h_p)), resident((1, h_p)), resident((1, h_p)),
        ],
        out_specs=pl.BlockSpec((tm, h_p), lambda i: (i, 0)),
        compiler_params=pltpu.CompilerParams(
            dimension_semantics=("parallel",),
            vmem_limit_bytes=64 * 1024 * 1024,
        ),
    )(x_p, w1, b1, g1, be1, w2, b2, g2, be2)

    return out[:batch, :hidden_dim]


def init_params(key, input_dim, hidden_dim):
    """Deterministic parameter init (mimics PyTorch Linear default init shapes)."""
    k1, k2, k3, k4 = jax.random.split(key, 4)
    lim1 = 1.0 / jnp.sqrt(input_dim)
    lim2 = 1.0 / jnp.sqrt(hidden_dim)
    # nn.Linear stores weight as (out, in); we keep (in, out) for direct x @ W.
    w1 = jax.random.uniform(k1, (input_dim, hidden_dim), jnp.float32, -lim1, lim1)
    b1 = jax.random.uniform(k2, (1, hidden_dim), jnp.float32, -lim1, lim1)
    w2 = jax.random.uniform(k3, (hidden_dim, hidden_dim), jnp.float32, -lim2, lim2)
    b2 = jax.random.uniform(k4, (1, hidden_dim), jnp.float32, -lim2, lim2)
    return {
        "w1": w1, "b1": b1,
        "ln1_g": jnp.ones((1, hidden_dim), jnp.float32),
        "ln1_b": jnp.zeros((1, hidden_dim), jnp.float32),
        "w2": w2, "b2": b2,
        "ln2_g": jnp.ones((1, hidden_dim), jnp.float32),
        "ln2_b": jnp.zeros((1, hidden_dim), jnp.float32),
    }


def feature_extractor_ref(x, p, matmul_dtype=jnp.float32):
    """Pure-JAX reference. matmul_dtype=bfloat16 mirrors the kernel's MXU input precision."""
    def layer(a, w, b, g, be):
        h = jnp.dot(a.astype(matmul_dtype), w.astype(matmul_dtype),
                    preferred_element_type=jnp.float32) + b
        mu = jnp.mean(h, axis=-1, keepdims=True)
        var = jnp.mean((h - mu) ** 2, axis=-1, keepdims=True)
        return jnp.maximum((h - mu) * jax.lax.rsqrt(var + LN_EPS) * g + be, 0.0)

    h = layer(x, p["w1"], p["b1"], p["ln1_g"], p["ln1_b"])
    return layer(h, p["w2"], p["b2"], p["ln2_g"], p["ln2_b"])


def _run_case(key, batch, input_dim, hidden_dim):
    kx, kp = jax.random.split(key)
    x = jax.random.normal(kx, (batch, input_dim), dtype=jnp.float32)
    params = init_params(kp, input_dim, hidden_dim)

    out = jax.block_until_ready(feature_extractor(x, params))
    assert out.shape == (batch, hidden_dim)

    # Tight check vs a reference with the same bf16-input / f32-accumulate matmuls.
    ref_bf16 = feature_extractor_ref(x, params, matmul_dtype=jnp.bfloat16)
    assert jnp.allclose(out, ref_bf16, atol=2e-2, rtol=2e-2), "mismatch vs bf16-matmul reference"

    # Sanity check vs the full-f32 reference (bf16 MXU inputs introduce small rounding).
    ref_f32 = feature_extractor_ref(x, params, matmul_dtype=jnp.float32)
    assert jnp.allclose(out, ref_f32, atol=1e-1, rtol=1e-1), "mismatch vs f32 reference"


if __name__ == "__main__":
    key = jax.random.PRNGKey(0)
    k_big, k_small = jax.random.split(key)

    # Lane-aligned shapes (multi-step batch grid, 2 grid iterations at TM=128).
    _run_case(k_big, batch=256, input_dim=128, hidden_dim=128)
    # Original small, unaligned shapes -> exercises the zero-padding path.
    _run_case(k_small, batch=8, input_dim=16, hidden_dim=32)

    print("KERNEL_OK")
</pallas_src>

<mosaic_0001>
module attributes {stable_mosaic.version = 11 : i64} {
  func.func @_feature_extractor_kernel(%arg0: i32, %arg1: memref<128x128xf32, #tpu.memory_space<vmem>>, %arg2: memref<128x128xbf16, #tpu.memory_space<vmem>>, %arg3: memref<1x128xf32, #tpu.memory_space<vmem>>, %arg4: memref<1x128xf32, #tpu.memory_space<vmem>>, %arg5: memref<1x128xf32, #tpu.memory_space<vmem>>, %arg6: memref<128x128xbf16, #tpu.memory_space<vmem>>, %arg7: memref<1x128xf32, #tpu.memory_space<vmem>>, %arg8: memref<1x128xf32, #tpu.memory_space<vmem>>, %arg9: memref<1x128xf32, #tpu.memory_space<vmem>>, %arg10: memref<128x128xf32, #tpu.memory_space<vmem>>) attributes {dimension_semantics = [#tpu.dimension_semantics<parallel>], iteration_bounds = array<i64: 2>, scalar_prefetch = 0 : i64, scratch_operands = 0 : i64, tpu.core_type = #tpu.core_type<tc>, window_params = [{transform_indices = @transform_0, window_bounds = array<i64: 128, 128>}, {pipeline_mode = #tpu.pipeline_mode<synchronous>, transform_indices = @transform_1, window_bounds = array<i64: 128, 128>}, {pipeline_mode = #tpu.pipeline_mode<synchronous>, transform_indices = @transform_2, window_bounds = array<i64: 1, 128>}, {pipeline_mode = #tpu.pipeline_mode<synchronous>, transform_indices = @transform_3, window_bounds = array<i64: 1, 128>}, {pipeline_mode = #tpu.pipeline_mode<synchronous>, transform_indices = @transform_4, window_bounds = array<i64: 1, 128>}, {pipeline_mode = #tpu.pipeline_mode<synchronous>, transform_indices = @transform_5, window_bounds = array<i64: 128, 128>}, {pipeline_mode = #tpu.pipeline_mode<synchronous>, transform_indices = @transform_6, window_bounds = array<i64: 1, 128>}, {pipeline_mode = #tpu.pipeline_mode<synchronous>, transform_indices = @transform_7, window_bounds = array<i64: 1, 128>}, {pipeline_mode = #tpu.pipeline_mode<synchronous>, transform_indices = @transform_8, window_bounds = array<i64: 1, 128>}, {transform_indices = @transform_9, window_bounds = array<i64: 128, 128>}]} {
    %c0 = arith.constant 0 : index
    %c0_0 = arith.constant 0 : index
    %0 = vector.load %arg1[%c0, %c0_0] : memref<128x128xf32, #tpu.memory_space<vmem>>, vector<128x128xf32>
    %1 = arith.truncf %0 : vector<128x128xf32> to vector<128x128xbf16>
    %c0_1 = arith.constant 0 : index
    %c0_2 = arith.constant 0 : index
    %2 = vector.load %arg2[%c0_1, %c0_2] : memref<128x128xbf16, #tpu.memory_space<vmem>>, vector<128x128xbf16>
    %cst = arith.constant dense<0.000000e+00> : vector<128x128xf32>
    %3 = tpu.matmul %1, %2, %cst {dimension_numbers = #tpu.dot_dimension_numbers<[1], [0], [0], [1], [0, 0, 1, 1], [], []>} : vector<128x128xbf16>, vector<128x128xbf16>, vector<128x128xf32> -> vector<128x128xf32>
    %c0_3 = arith.constant 0 : index
    %c0_4 = arith.constant 0 : index
    %4 = vector.load %arg3[%c0_3, %c0_4] : memref<1x128xf32, #tpu.memory_space<vmem>>, vector<1x128xf32>
    %5 = vector.broadcast %4 : vector<1x128xf32> to vector<128x128xf32>
    %6 = arith.addf %3, %5 : vector<128x128xf32>
    %cst_5 = arith.constant dense<0.000000e+00> : vector<128xf32>
    %7 = vector.multi_reduction <add>, %6, %cst_5 [1] : vector<128x128xf32> to vector<128xf32>
    %8 = vector.shape_cast %7 : vector<128xf32> to vector<128x1xf32>
    %cst_6 = arith.constant 7.812500e-03 : f32
    %9 = vector.broadcast %cst_6 : f32 to vector<128x1xf32>
    %10 = arith.mulf %8, %9 : vector<128x1xf32>
    %11 = arith.mulf %6, %6 : vector<128x128xf32>
    %cst_7 = arith.constant dense<0.000000e+00> : vector<128xf32>
    %12 = vector.multi_reduction <add>, %11, %cst_7 [1] : vector<128x128xf32> to vector<128xf32>
    %13 = vector.shape_cast %12 : vector<128xf32> to vector<128x1xf32>
    %cst_8 = arith.constant 7.812500e-03 : f32
    %14 = vector.broadcast %cst_8 : f32 to vector<128x1xf32>
    %15 = arith.mulf %13, %14 : vector<128x1xf32>
    %16 = arith.mulf %10, %10 : vector<128x1xf32>
    %17 = arith.subf %15, %16 : vector<128x1xf32>
    %cst_9 = arith.constant 0.000000e+00 : f32
    %18 = vector.broadcast %cst_9 : f32 to vector<128x1xf32>
    %19 = arith.maximumf %17, %18 : vector<128x1xf32>
    %20 = vector.broadcast %10 : vector<128x1xf32> to vector<128x128xf32>
    %21 = arith.subf %6, %20 : vector<128x128xf32>
    %cst_10 = arith.constant 9.99999974E-6 : f32
    %22 = vector.broadcast %cst_10 : f32 to vector<128x1xf32>
    %23 = arith.addf %19, %22 : vector<128x1xf32>
    %24 = math.rsqrt %23 : vector<128x1xf32>
    %25 = vector.broadcast %24 : vector<128x1xf32> to vector<128x128xf32>
    %26 = arith.mulf %21, %25 : vector<128x128xf32>
    %c0_11 = arith.constant 0 : index
    %c0_12 = arith.constant 0 : index
    %27 = vector.load %arg4[%c0_11, %c0_12] : memref<1x128xf32, #tpu.memory_space<vmem>>, vector<1x128xf32>
    %28 = vector.broadcast %27 : vector<1x128xf32> to vector<128x128xf32>
    %29 = arith.mulf %26, %28 : vector<128x128xf32>
    %c0_13 = arith.constant 0 : index
    %c0_14 = arith.constant 0 : index
    %30 = vector.load %arg5[%c0_13, %c0_14] : memref<1x128xf32, #tpu.memory_space<vmem>>, vector<1x128xf32>
    %31 = vector.broadcast %30 : vector<1x128xf32> to vector<128x128xf32>
    %32 = arith.addf %29, %31 : vector<128x128xf32>
    %cst_15 = arith.constant 0.000000e+00 : f32
    %33 = vector.broadcast %cst_15 : f32 to vector<128x128xf32>
    %34 = arith.maximumf %32, %33 : vector<128x128xf32>
    %35 = arith.truncf %34 : vector<128x128xf32> to vector<128x128xbf16>
    %c0_16 = arith.constant 0 : index
    %c0_17 = arith.constant 0 : index
    %36 = vector.load %arg6[%c0_16, %c0_17] : memref<128x128xbf16, #tpu.memory_space<vmem>>, vector<128x128xbf16>
    %cst_18 = arith.constant dense<0.000000e+00> : vector<128x128xf32>
    %37 = tpu.matmul %35, %36, %cst_18 {dimension_numbers = #tpu.dot_dimension_numbers<[1], [0], [0], [1], [0, 0, 1, 1], [], []>} : vector<128x128xbf16>, vector<128x128xbf16>, vector<128x128xf32> -> vector<128x128xf32>
    %c0_19 = arith.constant 0 : index
    %c0_20 = arith.constant 0 : index
    %38 = vector.load %arg7[%c0_19, %c0_20] : memref<1x128xf32, #tpu.memory_space<vmem>>, vector<1x128xf32>
    %39 = vector.broadcast %38 : vector<1x128xf32> to vector<128x128xf32>
    %40 = arith.addf %37, %39 : vector<128x128xf32>
    %cst_21 = arith.constant dense<0.000000e+00> : vector<128xf32>
    %41 = vector.multi_reduction <add>, %40, %cst_21 [1] : vector<128x128xf32> to vector<128xf32>
    %42 = vector.shape_cast %41 : vector<128xf32> to vector<128x1xf32>
    %cst_22 = arith.constant 7.812500e-03 : f32
    %43 = vector.broadcast %cst_22 : f32 to vector<128x1xf32>
    %44 = arith.mulf %42, %43 : vector<128x1xf32>
    %45 = arith.mulf %40, %40 : vector<128x128xf32>
    %cst_23 = arith.constant dense<0.000000e+00> : vector<128xf32>
    %46 = vector.multi_reduction <add>, %45, %cst_23 [1] : vector<128x128xf32> to vector<128xf32>
    %47 = vector.shape_cast %46 : vector<128xf32> to vector<128x1xf32>
    %cst_24 = arith.constant 7.812500e-03 : f32
    %48 = vector.broadcast %cst_24 : f32 to vector<128x1xf32>
    %49 = arith.mulf %47, %48 : vector<128x1xf32>
    %50 = arith.mulf %44, %44 : vector<128x1xf32>
    %51 = arith.subf %49, %50 : vector<128x1xf32>
    %cst_25 = arith.constant 0.000000e+00 : f32
    %52 = vector.broadcast %cst_25 : f32 to vector<128x1xf32>
    %53 = arith.maximumf %51, %52 : vector<128x1xf32>
    %54 = vector.broadcast %44 : vector<128x1xf32> to vector<128x128xf32>
    %55 = arith.subf %40, %54 : vector<128x128xf32>
    %cst_26 = arith.constant 9.99999974E-6 : f32
    %56 = vector.broadcast %cst_26 : f32 to vector<128x1xf32>
    %57 = arith.addf %53, %56 : vector<128x1xf32>
    %58 = math.rsqrt %57 : vector<128x1xf32>
    %59 = vector.broadcast %58 : vector<128x1xf32> to vector<128x128xf32>
    %60 = arith.mulf %55, %59 : vector<128x128xf32>
    %c0_27 = arith.constant 0 : index
    %c0_28 = arith.constant 0 : index
    %61 = vector.load %arg8[%c0_27, %c0_28] : memref<1x128xf32, #tpu.memory_space<vmem>>, vector<1x128xf32>
    %62 = vector.broadcast %61 : vector<1x128xf32> to vector<128x128xf32>
    %63 = arith.mulf %60, %62 : vector<128x128xf32>
    %c0_29 = arith.constant 0 : index
    %c0_30 = arith.constant 0 : index
    %64 = vector.load %arg9[%c0_29, %c0_30] : memref<1x128xf32, #tpu.memory_space<vmem>>, vector<1x128xf32>
    %65 = vector.broadcast %64 : vector<1x128xf32> to vector<128x128xf32>
    %66 = arith.addf %63, %65 : vector<128x128xf32>
    %cst_31 = arith.constant 0.000000e+00 : f32
    %67 = vector.broadcast %cst_31 : f32 to vector<128x128xf32>
    %68 = arith.maximumf %66, %67 : vector<128x128xf32>
    %c0_32 = arith.constant 0 : index
    %c0_33 = arith.constant 0 : index
    %69 = vector.load %arg10[%c0_32, %c0_33] : memref<128x128xf32, #tpu.memory_space<vmem>>, vector<128x128xf32>
    tpu.vector_store %arg10[%c0_32, %c0_33], %68 {strides = array<i32>} : memref<128x128xf32, #tpu.memory_space<vmem>>, vector<128x128xf32>,
    return
  }
  func.func @transform_0(%arg0: i32) -> (i32, i32) {
    %c0_i32 = arith.constant 0 : i32
    %c0_i32_0 = arith.constant 0 : i32
    return %arg0, %c0_i32 : i32, i32
  }
  func.func @transform_1(%arg0: i32) -> (i32, i32) {
    %c0_i32 = arith.constant 0 : i32
    %c0_i32_0 = arith.constant 0 : i32
    %c0_i32_1 = arith.constant 0 : i32
    return %c0_i32, %c0_i32_0 : i32, i32
  }
  func.func @transform_2(%arg0: i32) -> (i32, i32) {
    %c0_i32 = arith.constant 0 : i32
    %c0_i32_0 = arith.constant 0 : i32
    %c0_i32_1 = arith.constant 0 : i32
    return %c0_i32, %c0_i32_0 : i32, i32
  }
  func.func @transform_3(%arg0: i32) -> (i32, i32) {
    %c0_i32 = arith.constant 0 : i32
    %c0_i32_0 = arith.constant 0 : i32
    %c0_i32_1 = arith.constant 0 : i32
    return %c0_i32, %c0_i32_0 : i32, i32
  }
  func.func @transform_4(%arg0: i32) -> (i32, i32) {
    %c0_i32 = arith.constant 0 : i32
    %c0_i32_0 = arith.constant 0 : i32
    %c0_i32_1 = arith.constant 0 : i32
    return %c0_i32, %c0_i32_0 : i32, i32
  }
  func.func @transform_5(%arg0: i32) -> (i32, i32) {
    %c0_i32 = arith.constant 0 : i32
    %c0_i32_0 = arith.constant 0 : i32
    %c0_i32_1 = arith.constant 0 : i32
    return %c0_i32, %c0_i32_0 : i32, i32
  }
  func.func @transform_6(%arg0: i32) -> (i32, i32) {
    %c0_i32 = arith.constant 0 : i32
    %c0_i32_0 = arith.constant 0 : i32
    %c0_i32_1 = arith.constant 0 : i32
    return %c0_i32, %c0_i32_0 : i32, i32
  }
  func.func @transform_7(%arg0: i32) -> (i32, i32) {
    %c0_i32 = arith.constant 0 : i32
    %c0_i32_0 = arith.constant 0 : i32
    %c0_i32_1 = arith.constant 0 : i32
    return %c0_i32, %c0_i32_0 : i32, i32
  }
  func.func @transform_8(%arg0: i32) -> (i32, i32) {
    %c0_i32 = arith.constant 0 : i32
    %c0_i32_0 = arith.constant 0 : i32
    %c0_i32_1 = arith.constant 0 : i32
    return %c0_i32, %c0_i32_0 : i32, i32
  }
  func.func @transform_9(%arg0: i32) -> (i32, i32) {
    %c0_i32 = arith.constant 0 : i32
    %c0_i32_0 = arith.constant 0 : i32
    return %arg0, %c0_i32 : i32, i32
  }
}

</mosaic_0001>

<bundles_post_ra>
// kernel: tpu_custom_call.1
= control target key start
LH: loop header
LB: loop body
LE: loop exit
PB: predicated region body
PF: predicated region fallthrough
CT: control target
= control target key end

     0   :  { %s3197_s0 = inlined_call_operand.hbm [shape: f32[256,128], index: 0, kind: input, shape index: {}]   ;;  %s3198_s1 = inlined_call_operand.hbm [shape: bf16[128,128], index: 1, kind: input, shape index: {}]   ;;  %s3199_s2 = inlined_call_operand.hbm [shape: f32[1,128], index: 2, kind: input, shape index: {}]   ;;  %s3200_s3 = inlined_call_operand.hbm [shape: f32[1,128], index: 3, kind: input, shape index: {}]   ;;  %s3201_s4 = inlined_call_operand.hbm [shape: f32[1,128], index: 4, kind: input, shape index: {}]   ;;  %s3202_s5 = inlined_call_operand.hbm [shape: bf16[128,128], index: 5, kind: input, shape index: {}]   ;;  %s3203_s6 = inlined_call_operand.hbm [shape: f32[1,128], index: 6, kind: input, shape index: {}]   ;;  %s3204_s7 = inlined_call_operand.hbm [shape: f32[1,128], index: 7, kind: input, shape index: {}]   ;;  %s3205_s8 = inlined_call_operand.hbm [shape: f32[1,128], index: 8, kind: input, shape index: {}]   ;;  %s3206_s9 = inlined_call_operand.hbm [shape: f32[256,128], index: 9, kind: output, shape index: {}]  }
   0x1   :  { %3211 = sst [smem:[#allocation24_spill]] %s3198_s1 }
   0x2   :  { %3212 = sst [smem:[#allocation25_spill]] %s3206_s9 }
   0x3   :  { %14 = vsyncpa [#allocation3], 0 }
   0x4   :  { %16 = vsyncpa [#allocation3 + $0x1], 0 }
   0x5   :  { %17 = vsyncpa [#allocation6], 0 }
   0x6   :  { %18 = vsyncpa [#allocation9], 0 }
   0x7   :  { %19 = vsyncpa [#allocation12], 0 }
   0x8   :  { %20 = vsyncpa [#allocation15], 0 }
   0x9   :  { %21 = vsyncpa [#allocation4], 0 }
   0xa   :  { %23 = vsyncpa [#allocation4 + $0x1], 0  ;;  %s2344_s30 = smov 0   ;;  %s2346_s10 = smov 0  }
   0xb   :  { %s2348_s11 = smov 0   ;;  %s2350_s12 = smov 0  }
   0xc LB: > { %s2278_s13 = smov [#allocation5]   ;;  %s2365_s15 = sadd.s32 4294967295, %s2276_s12   ;;  %s2276_s12 = sphi %s2350_s12, %s3239_s12   ;;  %s2272_s11 = sphi %s2348_s11, %s3238_s11   ;;  %s2268_s10 = sphi %s2346_s10, %s3237_s10   ;;  %s2264_s30 = sphi %s2344_s30, %s3236_s30  }
   0xd   : > { %s266_s14 = sshll.u32 %s2278_s13, 4  ;;  %p1578_p0 = scmp.ge.s32.totalorder %s2276_s12, 1  ;;  %s2370_s14 = int_to_ptr.vmem [resolvable:$true] %s266_s14 }
   0xe   : > { %p3208_p1 = scmp.eq.s32.totalorder %s2365_s15, 0  ;;  %p254_p2 = scmp.lt.s32.totalorder %s2276_s12, 3 }
   0xf   : > { %s2279_s17 = smov [#allocation8]   ;;  %s2280_s20 = smov [#allocation11]  }
  0x10   : > { %p2372_p3 = pnand %p1578_p0, %p254_p2  ;;  %s291_s18 = sshll.u32 %s2279_s17, 4  ;;  %s2385_s18 = int_to_ptr.vmem [resolvable:$true] %s291_s18 }
  0x11   : > { %s312_s21 = sshll.u32 %s2280_s20, 4  ;;  %s3215_s1 = sld [smem:[#allocation24_spill]]  ;;  %s2387_s21 = int_to_ptr.vmem [resolvable:$true] %s312_s21 }
  0x12   : > { %s3213_s16 = scalar_select %p2372_p3, 1, 0 }
  0x13   : > { %p1763_p5 = pneg %p2372_p3 }
  0x15   : > { %p2381_p6 = pnand %p1763_p5, %p3208_p1 }
  0x17   : > { %s1940_s24 = scalar_lea.hbm %s3215_s1, 1024  ;;  %p2397_p8 = pneg %p2381_p6 }
  0x18   : > { %p1941_p7 = scmp.ne.s32.totalorder %s3215_s1, %s1940_s24  ;;  %p1947_p11 = scmp.lt.u32.totalorder %s1940_s24, %s3215_s1 }
  0x1a   : > { %p1943_p9 = pnand %p2397_p8, %p1941_p7 }
  0x1c   : > { %p1944_p10 = pneg %p1943_p9 }
  0x1e   : > { %p1949_p12 = pnand %p1947_p11, %p1944_p10 }
  0x20   : > { %1952 = shalt.err (!%p1949_p12)
}
  0x21   : > { %s1953_s13 = scalar_lea.vmem %s2370_s14, 1024  ;;  %p1961_p5 = scmp.lt.s32.totalorder %s2370_s14, %s2370_s14 }
  0x22   : > { %p1954_p13 = scmp.ne.s32.totalorder %s2370_s14, %s1953_s13  ;;  %p1962_p4 = scmp.lt.s32.totalorder %s1953_s13, %s1953_s13 }
  0x24   : > { %p1956_p0 = pnand %p1954_p13, %p2397_p8  ;;  %p1963_p7 = por %p1962_p4, %p1961_p5 }
  0x26   : > { %p1957_p2 = pneg %p1956_p0 }
  0x28   : > { %p1964_p9 = pnand %p1963_p7, %p1957_p2 }
  0x2a   : > { %1967 = shalt.err (!%p1964_p9)
}
  0x2b   : > { %s2281_s17 = smov 64   ;;  %s2282_s20 = smov 4  }
  0x2c   : > { %1766 = dma.hbm_to_vmem [thread:$0]  (!%p2381_p6), %s3215_s1, 1024, %s2370_s14, [#allocation6], %s2281_s17, %s2281_s17, %s2282_s20  }
  0x2d   : > { %s1968_s26 = scalar_lea.hbm %s3200_s3, 16 }
  0x2e   : > { %p1969_p4 = scmp.ne.s32.totalorder %s3200_s3, %s1968_s26  ;;  %p1975_p12 = scmp.lt.u32.totalorder %s1968_s26, %s3200_s3 }
  0x30   : > { %p1971_p10 = pnand %p1969_p4, %p2397_p8 }
  0x32   : > { %p1972_p11 = pneg %p1971_p10 }
  0x34   : > { %p1977_p13 = pnand %p1975_p12, %p1972_p11 }
  0x36   : > { %1980 = shalt.err (!%p1977_p13)
}
  0x37   : > { %s1981_s14 = scalar_lea.vmem %s2385_s18, 16  ;;  %s1988_s22 = scalar_lea.vmem %s2385_s18, 32 }
  0x38   : > { %p1982_p0 = scmp.ne.s32.totalorder %s2385_s18, %s1981_s14  ;;  %p1989_p7 = scmp.lt.s32.totalorder %s2385_s18, %s2385_s18 }
  0x39   : > { %p1990_p9 = scmp.lt.s32.totalorder %s1988_s22, %s1981_s14 }
  0x3a   : > { %p1984_p2 = pnand %p1982_p0, %p2397_p8 }
  0x3b   : > { %p1991_p4 = por %p1990_p9, %p1989_p7 }
  0x3c   : > { %p1985_p5 = pneg %p1984_p2 }
  0x3e   : > { %p1992_p10 = pnand %p1991_p4, %p1985_p5 }
  0x40   : > { %1995 = shalt.err (!%p1992_p10)
}
  0x41   : > { %1772 = dma.hbm_to_vmem [thread:$0]  (!%p2381_p6), %s3200_s3, 16, %s2385_s18, [#allocation9]  }
  0x42   : > { %s1996_s26 = scalar_lea.hbm %s3202_s5, 1024 }
  0x43   : > { %p1997_p11 = scmp.ne.s32.totalorder %s3202_s5, %s1996_s26  ;;  %p2003_p0 = scmp.lt.u32.totalorder %s1996_s26, %s3202_s5 }
  0x45   : > { %p1999_p12 = pnand %p1997_p11, %p2397_p8 }
  0x47   : > { %p2000_p13 = pneg %p1999_p12 }
  0x49   : > { %p2005_p2 = pnand %p2003_p0, %p2000_p13 }
  0x4b   : > { %2008 = shalt.err (!%p2005_p2)
}
  0x4c   : > { %s2009_s18 = scalar_lea.vmem %s2387_s21, 1024  ;;  %p2017_p4 = scmp.lt.s32.totalorder %s2387_s21, %s2387_s21 }
  0x4d   : > { %p2010_p5 = scmp.ne.s32.totalorder %s2387_s21, %s2009_s18  ;;  %p2018_p10 = scmp.lt.s32.totalorder %s2009_s18, %s2009_s18 }
  0x4f   : > { %p2012_p7 = pnand %p2010_p5, %p2397_p8  ;;  %p2019_p11 = por %p2018_p10, %p2017_p4 }
  0x51   : > { %p2013_p9 = pneg %p2012_p7 }
  0x53   : > { %p2020_p12 = pnand %p2019_p11, %p2013_p9 }
  0x55   : > { %2023 = shalt.err (!%p2020_p12)
}
  0x56   : > { %1778 = dma.hbm_to_vmem [thread:$0]  (!%p2381_p6), %s3202_s5, 1024, %s2387_s21, [#allocation12], %s2281_s17, %s2281_s17, %s2282_s20  }
  0x57   : > { %s2283_s23 = smov [#allocation14]   ;;  %s2284_s25 = smov [#allocation7]  }
  0x58   : > { %s337_s24 = sshll.u32 %s2283_s23, 4  ;;  %s280_s26 = sshll.u32 %s2284_s25, 4  ;;  %s338_s24 = int_to_ptr.vmem [resolvable:$true] %s337_s24  ;;  %s281_s26 = int_to_ptr.vmem [resolvable:$true] %s280_s26 }
  0x59   : > { %s2024_s13 = scalar_lea.hbm %s3204_s7, 16 }
  0x5a   : > { %p2025_p13 = scmp.ne.s32.totalorder %s3204_s7, %s2024_s13  ;;  %p2031_p5 = scmp.lt.u32.totalorder %s2024_s13, %s3204_s7 }
  0x5c   : > { %p2027_p0 = pnand %p2025_p13, %p2397_p8 }
  0x5e   : > { %p2028_p2 = pneg %p2027_p0 }
  0x60   : > { %p2033_p7 = pnand %p2031_p5, %p2028_p2 }
  0x62   : > { %2036 = shalt.err (!%p2033_p7)
}
  0x63   : > { %s2037_s21 = scalar_lea.vmem %s338_s24, 16  ;;  %s2044_s17 = scalar_lea.vmem %s338_s24, 32 }
  0x64   : > { %p2038_p9 = scmp.ne.s32.totalorder %s338_s24, %s2037_s21  ;;  %p2045_p11 = scmp.lt.s32.totalorder %s338_s24, %s338_s24 }
  0x65   : > { %p2046_p12 = scmp.lt.s32.totalorder %s2044_s17, %s2037_s21 }
  0x66   : > { %p2040_p4 = pnand %p2038_p9, %p2397_p8 }
  0x67   : > { %p2047_p1 = por %p2046_p12, %p2045_p11 }
  0x68   : > { %p2041_p10 = pneg %p2040_p4 }
  0x6a   : > { %p2048_p3 = pnand %p2047_p1, %p2041_p10 }
  0x6c   : > { %2051 = shalt.err (!%p2048_p3)
}
  0x6d   : > { %1784 = dma.hbm_to_vmem [thread:$0]  (!%p2381_p6), %s3204_s7, 16, %s338_s24, [#allocation15]  }
  0x6e   : > { %s2052_s25 = scalar_lea.hbm %s3199_s2, 16 }
  0x6f   : > { %p2053_p13 = scmp.ne.s32.totalorder %s3199_s2, %s2052_s25  ;;  %p2059_p3 = scmp.lt.u32.totalorder %s2052_s25, %s3199_s2 }
  0x71   : > { %p2055_p0 = pnand %p2053_p13, %p2397_p8 }
  0x73   : > { %p2056_p1 = pneg %p2055_p0 }
  0x75   : > { %p2061_p2 = pnand %p2059_p3, %p2056_p1 }
  0x77   : > { %2064 = shalt.err (!%p2061_p2)
}
  0x78   : > { %s2065_s18 = scalar_lea.vmem %s281_s26, 16  ;;  %s2072_s24 = scalar_lea.vmem %s281_s26, 32 }
  0x79   : > { %p2066_p5 = scmp.ne.s32.totalorder %s281_s26, %s2065_s18  ;;  %p2073_p4 = scmp.lt.s32.totalorder %s281_s26, %s281_s26 }
  0x7a   : > { %p2074_p10 = scmp.lt.s32.totalorder %s2072_s24, %s2065_s18 }
  0x7b   : > { %p2068_p7 = pnand %p2066_p5, %p2397_p8 }
  0x7c   : > { %p2075_p11 = por %p2074_p10, %p2073_p4 }
  0x7d   : > { %p2069_p9 = pneg %p2068_p7 }
  0x7f   : > { %p2076_p12 = pnand %p2075_p11, %p2069_p9 }
  0x81   : > { %2079 = shalt.err (!%p2076_p12)
}
  0x82   : > { %1769 = dma.hbm_to_vmem [thread:$0]  (!%p2381_p6), %s3199_s2, 16, %s281_s26, [#allocation6]  }
  0x83   : > { %s2285_s17 = smov [#allocation10]   ;;  %s2286_s9 = smov [#allocation13]  }
  0x84   : > { %s302_s20 = sshll.u32 %s2285_s17, 4  ;;  %s326_s1 = sshll.u32 %s2286_s9, 4  ;;  %s303_s20 = int_to_ptr.vmem [resolvable:$true] %s302_s20  ;;  %s327_s1 = int_to_ptr.vmem [resolvable:$true] %s326_s1 }
  0x85   : > { %s2080_s28 = scalar_lea.hbm %s3201_s4, 16 }
  0x86   : > { %p2081_p13 = scmp.ne.s32.totalorder %s3201_s4, %s2080_s28  ;;  %p2087_p3 = scmp.lt.u32.totalorder %s2080_s28, %s3201_s4 }
  0x88   : > { %p2083_p0 = pnand %p2081_p13, %p2397_p8 }
  0x8a   : > { %p2084_p1 = pneg %p2083_p0 }
  0x8c   : > { %p2089_p2 = pnand %p2087_p3, %p2084_p1 }
  0x8e   : > { %2092 = shalt.err (!%p2089_p2)
}
  0x8f   : > { %s2093_s26 = scalar_lea.vmem %s303_s20, 16  ;;  %s2100_s24 = scalar_lea.vmem %s303_s20, 32 }
  0x90   : > { %p2094_p5 = scmp.ne.s32.totalorder %s303_s20, %s2093_s26  ;;  %p2101_p4 = scmp.lt.s32.totalorder %s303_s20, %s303_s20 }
  0x91   : > { %p2102_p10 = scmp.lt.s32.totalorder %s2100_s24, %s2093_s26 }
  0x92   : > { %p2096_p7 = pnand %p2094_p5, %p2397_p8 }
  0x93   : > { %p2103_p11 = por %p2102_p10, %p2101_p4 }
  0x94   : > { %p2097_p9 = pneg %p2096_p7 }
  0x96   : > { %p2104_p12 = pnand %p2103_p11, %p2097_p9 }
  0x98   : > { %2107 = shalt.err (!%p2104_p12)
}
  0x99   : > { %1775 = dma.hbm_to_vmem [thread:$0]  (!%p2381_p6), %s3201_s4, 16, %s303_s20, [#allocation9]  }
  0x9a   : > { %s2108_s23 = scalar_lea.hbm %s3203_s6, 16 }
  0x9b   : > { %p2109_p13 = scmp.ne.s32.totalorder %s3203_s6, %s2108_s23  ;;  %p2115_p3 = scmp.lt.u32.totalorder %s2108_s23, %s3203_s6 }
  0x9d   : > { %p2111_p0 = pnand %p2109_p13, %p2397_p8 }
  0x9f   : > { %p2112_p1 = pneg %p2111_p0 }
  0xa1   : > { %p2117_p2 = pnand %p2115_p3, %p2112_p1 }
  0xa3   : > { %2120 = shalt.err (!%p2117_p2)
}
  0xa4   : > { %s2121_s14 = scalar_lea.vmem %s327_s1, 16  ;;  %s2128_s20 = scalar_lea.vmem %s327_s1, 32 }
  0xa5   : > { %p2122_p5 = scmp.ne.s32.totalorder %s327_s1, %s2121_s14  ;;  %p2129_p4 = scmp.lt.s32.totalorder %s327_s1, %s327_s1 }
  0xa6   : > { %p2130_p10 = scmp.lt.s32.totalorder %s2128_s20, %s2121_s14 }
  0xa7   : > { %p2124_p7 = pnand %p2122_p5, %p2397_p8 }
  0xa8   : > { %p2131_p11 = por %p2130_p10, %p2129_p4 }
  0xa9   : > { %p2125_p9 = pneg %p2124_p7 }
  0xab   : > { %p2132_p12 = pnand %p2131_p11, %p2125_p9 }
  0xad   : > { %2135 = shalt.err (!%p2132_p12)
}
  0xae   : > { %1781 = dma.hbm_to_vmem [thread:$0]  (!%p2381_p6), %s3203_s6, 16, %s327_s1, [#allocation12]  }
  0xaf   : > { %s2287_s24 = smov [#allocation16]   ;;  %s2136_s9 = scalar_lea.hbm %s3205_s8, 16 }
  0xb0   : > { %s348_s22 = sshll.u32 %s2287_s24, 4  ;;  %p2137_p13 = scmp.ne.s32.totalorder %s3205_s8, %s2136_s9  ;;  %s349_s22 = int_to_ptr.vmem [resolvable:$true] %s348_s22 }
  0xb1   : > { %p2143_p3 = scmp.lt.u32.totalorder %s2136_s9, %s3205_s8 }
  0xb2   : > { %p2139_p0 = pnand %p2137_p13, %p2397_p8 }
  0xb4   : > { %p2140_p1 = pneg %p2139_p0 }
  0xb6   : > { %p2145_p2 = pnand %p2143_p3, %p2140_p1 }
  0xb8   : > { %2148 = shalt.err (!%p2145_p2)
}
  0xb9   : > { %s2149_s1 = scalar_lea.vmem %s349_s22, 16  ;;  %s2156_s13 = scalar_lea.vmem %s349_s22, 32 }
  0xba   : > { %p2150_p5 = scmp.ne.s32.totalorder %s349_s22, %s2149_s1  ;;  %p2157_p4 = scmp.lt.s32.totalorder %s349_s22, %s349_s22 }
  0xbb   : > { %p2158_p10 = scmp.lt.s32.totalorder %s2156_s13, %s2149_s1 }
  0xbc   : > { %p2152_p7 = pnand %p2150_p5, %p2397_p8 }
  0xbd   : > { %p2159_p11 = por %p2158_p10, %p2157_p4 }
  0xbe   : > { %p2153_p9 = pneg %p2152_p7 }
  0xc0   : > { %p2160_p12 = pnand %p2159_p11, %p2153_p9 }
  0xc2   : > { %2163 = shalt.err (!%p2160_p12)
}
  0xc3   : > { %1787 = dma.hbm_to_vmem [thread:$0]  (!%p2381_p6), %s3205_s8, 16, %s349_s22, [#allocation15]  }
  0xc4   : > { %s1577_s27 = sadd.s32 4294967294, %s2276_s12   ;;  %s2563_s19 = sadd.s32 1, %s2276_s12  }
  0xc5   : > { %s33_s18 = ssub.s32 %s2276_s12, %s2563_s19  ;;  %s36_s26 = sadd.s32 1, %s2272_s11 }
  0xc6   : > { %p34_p8 = scmp.eq.s32.totalorder %s33_s18, 0  ;;  %p43_p13 = scmp.ne.s32.totalorder %s2272_s11, %s2268_s10 }
  0xc7   : > { %p44_p0 = scmp.eq.s32.totalorder %s2276_s12, 0  ;;  %p49_p1 = scmp.ne.s32.totalorder %s2268_s10, %s2264_s30 }
  0xc8   : > { %s2574_s24 = scalar_select %p34_p8, %s2272_s11, %s36_s26  }
  0xc9   : > { %p2576_p3 = por %p44_p0, %p43_p13  ;;  %p3218_p2 = scmp.eq.s32.totalorder %s2365_s15, 0 }
  0xca   : > { %p241_p5 = scmp.eq.s32.totalorder %s2365_s15, 1  ;;  %p247_p7 = scmp.eq.s32.totalorder %s1577_s27, 1 }
  0xcb   : > { %p2582_p6 = por %p3218_p2, %p49_p1  ;;  %p1804_p9 = scmp.lt.s32.totalorder %s2276_s12, 2 }
  0xcc   : > { %s359_s17 = sand.u32 1, %s2272_s11   ;;  %p2589_p4 = por %p241_p5, %p43_p13 }
  0xcd   : > { %p2593_p10 = por %p247_p7, %p49_p1  ;;  %s1588_s25 = sshll.u32 %s359_s17, 7 }
  0xce   : > { %s3220_s9 = scalar_select %p2589_p4, 1, 0 }
  0xcf   : > { %s3221_s23 = scalar_select %p2593_p10, 1, 0 }
  0xd0   : > { %s1629_s28 = sshll.u32 %s2276_s12, 11  ;;  %s363_s14 = scalar_lea.vmem [#allocation2], %s1588_s25 }
  0xd1   : > { %s2601_s13 = scalar_lea.hbm %s3197_s0, %s1629_s28  ;;  %s370_s20 = sshll.u32 %s363_s14, 4  ;;  %s2603_s20 = int_to_ptr.vmem [resolvable:$true] %s370_s20 }
  0xd2   : > { %p2607_p11 = pnand %p1804_p9, %p2576_p3  ;;  %s2611_s18 = scalar_lea.sflag [#allocation3], %s359_s17 }
  0xd3   : > { %s2164_s26 = scalar_lea.hbm %s2601_s13, 2048  ;;  %s2169_s21 = scalar_lea.hbm %s3197_s0, 4096 }
  0xd4   : > { %p2165_p12 = scmp.ne.s32.totalorder %s2601_s13, %s2164_s26  ;;  %p2166_p8 = pneg %p2607_p11 }
  0xd5   : > { %p2170_p1 = scmp.lt.u32.totalorder %s2601_s13, %s3197_s0  ;;  %p2171_p3 = scmp.lt.u32.totalorder %s2169_s21, %s2164_s26 }
  0xd6   : > { %p2167_p13 = pnand %p2166_p8, %p2165_p12  ;;  %p2173_p5 = scmp.lt.u32.totalorder %s2164_s26, %s2601_s13 }
  0xd7   : > { %p2172_p2 = por %p2171_p3, %p2170_p1 }
  0xd8   : > { %p2168_p0 = pneg %p2167_p13 }
  0xd9   : > { %p2174_p7 = por %p2173_p5, %p2172_p2 }
  0xdb   : > { %p2175_p9 = pnand %p2174_p7, %p2168_p0 }
  0xdd   : > { %2178 = shalt.err (!%p2175_p9)
}
  0xde   : > { %s2179_s17 = scalar_lea.vmem %s2603_s20, 2048  ;;  %s2288_s14 = smov [#allocation2]  }
  0xdf   : > { %p2180_p12 = scmp.ne.s32.totalorder %s2603_s20, %s2179_s17  ;;  %s2184_s25 = sshll.u32 %s2288_s14, 4  ;;  %s2185_s25 = int_to_ptr.vmem [resolvable:$false] %s2184_s25 }
  0xe0   : > { %s2186_s28 = scalar_lea.vmem %s2185_s25, 4096  ;;  %p2187_p4 = scmp.lt.s32.totalorder %s2603_s20, %s2185_s25 }
  0xe1   : > { %p2182_p13 = pnand %p2180_p12, %p2166_p8  ;;  %p2188_p1 = scmp.lt.s32.totalorder %s2186_s28, %s2179_s17 }
  0xe3   : > { %p2183_p10 = pneg %p2182_p13  ;;  %p2189_p3 = por %p2188_p1, %p2187_p4 }
  0xe5   : > { %p2190_p2 = pnand %p2189_p3, %p2183_p10 }
  0xe7   : > { %2193 = shalt.err (!%p2190_p2)
}
  0xe8   : > { %s2289_s26 = smov 128   ;;  %s2290_s21 = smov 8  }
  0xe9   : > { %1791 = dma.hbm_to_vmem [thread:$0]  (!%p2607_p11), %s2601_s13, 2048, %s2603_s20, %s2611_s18, %s2289_s26, %s2289_s26, %s2290_s21  }
  0xea   : > { %p3223_p8 = scmp.ne.s32.totalorder %s3213_s16, 0 }
  0xeb   : > { %s2642_s29 = sand.u32 (!%p3223_p8), 1, %s2268_s10  }
  0xec   : > { %382 = sbr.rel (%p3223_p8) target bundleno = 1149 (0x47d), region = 56  ;;  %s1592_s1 = sshll.u32 (!%p3223_p8), %s2642_s29, 7 }
  0xed   : > { %s385_s17 = scalar_lea.sflag (!%p3223_p8), [#allocation3], %s2642_s29  ;;  %s2648_s14 = scalar_lea.vmem (!%p3223_p8), [#allocation2], %s1592_s1 }
  0xf3   : > { %2239 = dma.done.wait (%p2582_p6), %s385_s17, 2048  }
  0xf4   : > { %2241 = vsyncadd (%p2582_p6), %s385_s17, 4294965248  ;;  %p3224_p4 = scmp.eq.s32.totalorder %s2365_s15, 0 }
  0xf6   : > { %2243 = dma.done.wait (%p3224_p4), [#allocation6], 1040   ;;  %p3225_p10 = pmov %p3224_p4 }
  0xf7   : > { %p3226_p11 = pmov %p3224_p4 }
  0xf8   : > { %2245 = vsyncadd (%p3225_p10), [#allocation6], 4294966256 }
  0xf9   : > { %2247 = dma.done.wait (%p3226_p11), [#allocation9], 32   ;;  %p3227_p0 = pmov %p3224_p4 }
  0xfb   : > { %2249 = vsyncadd (%p3227_p0), [#allocation9], 4294967264  ;;  %p3228_p5 = pmov %p3227_p0 }
  0xfc   : > { %p3229_p7 = pmov %p3227_p0 }
  0xfd   : > { %2251 = dma.done.wait (%p3228_p5), [#allocation12], 1040  }
  0xfe   : > { %2253 = vsyncadd (%p3229_p7), [#allocation12], 4294966256  ;;  %p3230_p6 = pmov %p3227_p0 }
  0xff   : > { %p3231_p9 = pmov %p3227_p0 }
 0x100   : > { %2255 = dma.done.wait (%p3230_p6), [#allocation15], 32  }
 0x101   : > { %2257 = vsyncadd (%p3231_p9), [#allocation15], 4294967264  ;;  %v1860_v0 = vld [vmem:[#allocation5] sm:$0xff]   ;;  %v1861_v1 = vld [vmem:[#allocation5 + $0x8] sm:$0xff]   ;;  %s3045_s16 = scalar_lea.vmem [#allocation17], %s1592_s1  ;;  %s1630_s22 = sshll.u32 %s2365_s15, 11 }
 0x102   : > { %1663 = vmatprep.subr.bf16.mxu0 %v1860_v0  ;;  %v1862_v2 = vld [vmem:[#allocation5 + $0x10] sm:$0xff]   ;;  %v1863_v3 = vld [vmem:[#allocation5 + $0x18] sm:$0xff]   ;;  %v458_v4 = vld [vmem:[%s2648_s14] sm:$0xff]  ;;  %s1428_s13 = sshll.u32 %s3045_s16, 4  ;;  %s3232_s18 = sld [smem:[#allocation25_spill]]  ;;  %s3152_s13 = int_to_ptr.vmem [resolvable:$true] %s1428_s13 }
 0x103   : > { %1664 = vmatpush3.bf16.msra.mxu0 %v1860_v0  ;;  %v459_v5 = vld [vmem:[%s2648_s14 + $0x8] sm:$0xff]  ;;  %v1864_v7 = vld [vmem:[#allocation5 + $0x20] sm:$0xff]   ;;  %v1866_v9 = vld [vmem:[#allocation5 + $0x30] sm:$0xff]   ;;  %s1415_s28 = scalar_lea.sflag [#allocation4], %s2642_s29  ;;  %s2194_s15 = scalar_lea.vmem %s3152_s13, 2048 }
 0x104   : > { %1665 = vmatprep.subr.bf16.mxu0 %v1861_v1  ;;  %v474_v6 = vpack.c.bf16 %v459_v5, %v458_v4  ;;  %v1865_v8 = vld [vmem:[#allocation5 + $0x28] sm:$0xff]   ;;  %v1867_v10 = vld [vmem:[#allocation5 + $0x38] sm:$0xff]   ;;  %v460_v11 = vld [vmem:[%s2648_s14 + $0x10] sm:$0xff]  ;;  %p2195_p12 = scmp.ne.s32.totalorder %s3152_s13, %s2194_s15  ;;  %p3233_p13 = scmp.ne.s32.totalorder %s3220_s9, 0 }
 0x105   : > { %v461_v12 = vld [vmem:[%s2648_s14 + $0x18] sm:$0xff]  ;;  %v462_v13 = vld [vmem:[%s2648_s14 + $0x20] sm:$0xff]  ;;  %v463_v14 = vld [vmem:[%s2648_s14 + $0x28] sm:$0xff]  ;;  %s2291_s26 = smov [#allocation17]  }
 0x106   : > { %1679 = vmatprep.mubr.bf16.mxu0 %v474_v6  ;;  %v475_v15 = vpack.c.bf16 %v461_v12, %v460_v11  ;;  %v476_v16 = vpack.c.bf16 %v463_v14, %v462_v13  ;;  %v464_v17 = vld [vmem:[%s2648_s14 + $0x30] sm:$0xff]  ;;  %v465_v18 = vld [vmem:[%s2648_s14 + $0x38] sm:$0xff]  ;;  %v466_v19 = vld [vmem:[%s2648_s14 + $0x40] sm:$0xff]  ;;  %p2196_p1 = pnand %p2195_p12, %p3233_p13  ;;  %s2198_s21 = sshll.u32 %s2291_s26, 4  ;;  %s2199_s21 = int_to_ptr.vmem [resolvable:$false] %s2198_s21 }
 0x107   : > { %1666 = vmatpush3.bf16.msra.mxu0 %v1861_v1  ;;  %v467_v20 = vld [vmem:[%s2648_s14 + $0x48] sm:$0xff]  ;;  %v477_v21 = vpack.c.bf16 %v465_v18, %v464_v17  ;;  %v468_v23 = vld [vmem:[%s2648_s14 + $0x50] sm:$0xff]  ;;  %v469_v24 = vld [vmem:[%s2648_s14 + $0x58] sm:$0xff]  ;;  %s2200_s1 = scalar_lea.vmem %s2199_s21, 4096  ;;  %p2201_p2 = scmp.lt.s32.totalorder %s3152_s13, %s2199_s21 }
 0x108   : > { %1667 = vmatprep.subr.bf16.mxu0 %v1862_v2  ;;  %v478_v22 = vpack.c.bf16 %v467_v20, %v466_v19  ;;  %v470_v25 = vld [vmem:[%s2648_s14 + $0x60] sm:$0xff]  ;;  %v471_v26 = vld [vmem:[%s2648_s14 + $0x68] sm:$0xff]  ;;  %v479_v27 = vpack.c.bf16 %v469_v24, %v468_v23  ;;  %v472_v29 = vld [vmem:[%s2648_s14 + $0x70] sm:$0xff]  ;;  %s3150_s25 = scalar_lea.hbm %s3232_s18, %s1630_s22  ;;  %p2197_p3 = pneg %p2196_p1 }
 0x109   : > { %v480_v28 = vpack.c.bf16 %v471_v26, %v470_v25  ;;  %v473_v30 = vld [vmem:[%s2648_s14 + $0x78] sm:$0xff]  ;;  %v2686_v32 = vld [vmem:[#allocation7] ss:$0 sm:$0xff]  ;;  %v1868_v62 = vld [vmem:[#allocation11] sm:$0xff]   ;;  %p2202_p8 = scmp.lt.s32.totalorder %s2200_s1, %s2194_s15 }
 0x10a   : > { %v481_v31 = vpack.c.bf16 %v473_v30, %v472_v29  ;;  %1695 = vmatprep.subr.bf16.mxu1 %v1868_v62  ;;  %v1870_v5 = vld [vmem:[#allocation11 + $0x10] sm:$0xff]   ;;  %v1872_v11 = vld [vmem:[#allocation11 + $0x20] sm:$0xff]   ;;  %v1873_v14 = vld [vmem:[#allocation11 + $0x28] sm:$0xff]  }
 0x10b   : > { %1668 = vmatpush3.bf16.msra.mxu0 %v1862_v2  ;;  %1696 = vmatpush3.bf16.msra.mxu1 %v1868_v62  ;;  %v1869_v2 = vld [vmem:[#allocation11 + $0x8] sm:$0xff]   ;;  %v1874_v17 = vld [vmem:[#allocation11 + $0x30] sm:$0xff]   ;;  %v1875_v20 = vld [vmem:[#allocation11 + $0x38] sm:$0xff]   ;;  %p2203_p4 = por %p2202_p8, %p2201_p2 }
 0x10c   : > { %1669 = vmatprep.subr.bf16.mxu0 %v1863_v3  ;;  %1697 = vmatprep.subr.bf16.mxu1 %v1869_v2 }
 0x10d   : > { %p2204_p10 = pnand %p2203_p4, %p2197_p3 }
 0x10f   : > { %1670 = vmatpush3.bf16.msra.mxu0 %v1863_v3  ;;  %1698 = vmatpush3.bf16.msra.mxu1 %v1869_v2 }
 0x110   : > { %1671 = vmatprep.subr.bf16.mxu0 %v1864_v7  ;;  %1699 = vmatprep.subr.bf16.mxu1 %v1870_v5 }
 0x113   : > { %1672 = vmatpush3.bf16.msra.mxu0 %v1864_v7  ;;  %1700 = vmatpush3.bf16.msra.mxu1 %v1870_v5 }
 0x114   : > { %1673 = vmatprep.subr.bf16.mxu0 %v1865_v8 }
 0x117   : > { %1674 = vmatpush3.bf16.msra.mxu0 %v1865_v8  ;;  %v1871_v8 = vld [vmem:[#allocation11 + $0x18] sm:$0xff]  }
 0x118   : > { %1675 = vmatprep.subr.bf16.mxu0 %v1866_v9  ;;  %1701 = vmatprep.subr.bf16.mxu1 %v1871_v8 }
 0x119   : > { %1702 = vmatpush3.bf16.msra.mxu1 %v1871_v8 }
 0x11a   : > { %1703 = vmatprep.subr.bf16.mxu1 %v1872_v11 }
 0x11b   : > { %1676 = vmatpush3.bf16.msra.mxu0 %v1866_v9 }
 0x11c   : > { %1677 = vmatprep.subr.bf16.mxu0 %v1867_v10 }
 0x11d   : > { %1704 = vmatpush3.bf16.msra.mxu1 %v1872_v11 }
 0x11e   : > { %1705 = vmatprep.subr.bf16.mxu1 %v1873_v14 }
 0x11f   : > { %1678 = vmatpush3.bf16.msra.mxu0 %v1867_v10 }
 0x121   : > { %1706 = vmatpush3.bf16.msra.mxu1 %v1873_v14 }
 0x122   : > { %1680 = vmatmul.mubr.bf16.vlgmr.msra.gmra.mrb[0].mxu0 %v475_v15  ;;  %1707 = vmatprep.subr.bf16.mxu1 %v1874_v17 }
 0x123   : > { %1683 = vmatprep.mubr.bf16.mxu0 %v476_v16 }
 0x125   : > { %1708 = vmatpush3.bf16.msra.mxu1 %v1874_v17 }
 0x126   : > { %1709 = vmatprep.subr.bf16.mxu1 %v1875_v20 }
 0x129   : > { %1710 = vmatpush3.bf16.msra.mxu1 %v1875_v20 }
 0x12a   : > { %1684 = vmatmul.mubr.bf16.gmra.mrb[4].mxu0 %v477_v21 }
 0x12b   : > { %1687 = vmatprep.mubr.bf16.mxu0 %v478_v22 }
 0x132   : > { %1688 = vmatmul.mubr.bf16.gmra.mrb[8].mxu0 %v479_v27 }
 0x133   : > { %1691 = vmatprep.mubr.bf16.mxu0 %v480_v28 }
 0x13a   : > { %1692 = vmatmul.mubr.bf16.gmra.mrb[12].mxu0 %v481_v31 }
 0x1f5   : > { %v1681_v33 = vpop.f32.mrb[0].mxu0 }
 0x1f6   : > { %v2689_v34 = vadd.f32 %v1681_v33, %v2686_v32  ;;  %v587_v35 = vpop.f32.mrb[1].mxu0 }
 0x1f7   : > { %v2692_v36 = vadd.f32 %v2686_v32, %v587_v35  ;;  %v1682_v37 = vpop.f32.mrb[2].mxu0 }
 0x1f8   : > { %654 = vadd.xlane.f32.xlu1 %v2689_v34  ;;  %v590_v38 = vpop.f32.mrb[3].mxu0  ;;  %v2697_v39 = vadd.f32 %v1682_v37, %v2686_v32  ;;  %v700_v40 = vmul.f32 %v2689_v34, %v2689_v34 }
 0x1f9   : > { %650 = vadd.xlane.f32.xlu0 %v2692_v36  ;;  %v2703_v42 = vadd.f32 %v2686_v32, %v590_v38  ;;  %v698_v48 = vmul.f32 %v2692_v36, %v2692_v36 }
 0x1fa   : > { %v701_v43 = vmul.f32 %v2697_v39, %v2697_v39 }
 0x1fb   : > { %v699_v47 = vmul.f32 %v2703_v42, %v2703_v42 }
 0x1fc   : > { %656 = vadd.xlane.f32.xlu1 %v2697_v39 }
 0x1fd   : > { %718 = vadd.xlane.f32.xlu0 %v700_v40  ;;  %v1685_v41 = vpop.f32.mrb[4].mxu0 }
 0x1fe   : > { %v603_v44 = vpop.f32.mrb[5].mxu0  ;;  %v2716_v52 = vadd.f32 %v1685_v41, %v2686_v32 }
 0x1ff   : > { %v1686_v45 = vpop.f32.mrb[6].mxu0  ;;  %v2724_v56 = vadd.f32 %v2686_v32, %v603_v44 }
 0x200   : > { %720 = vadd.xlane.f32.xlu1 %v701_v43  ;;  %v606_v46 = vpop.f32.mrb[7].mxu0  ;;  %v2713_v49 = vadd.f32 %v1686_v45, %v2686_v32  ;;  %v704_v60 = vmul.f32 %v2716_v52, %v2716_v52 }
 0x201   : > { %652 = vadd.xlane.f32.xlu0 %v2703_v42  ;;  %v2721_v55 = vadd.f32 %v2686_v32, %v606_v46  ;;  %v702_v1 = vmul.f32 %v2724_v56, %v2724_v56 }
 0x202   : > { %v705_v58 = vmul.f32 %v2713_v49, %v2713_v49 }
 0x203   : > { %v703_v0 = vmul.f32 %v2721_v55, %v2721_v55 }
 0x204   : > { %716 = vadd.xlane.f32.xlu1 %v699_v47 }
 0x205   : > { %714 = vadd.xlane.f32.xlu0 %v698_v48  ;;  %v1689_v50 = vpop.f32.mrb[8].mxu0 }
 0x206   : > { %v619_v51 = vpop.f32.mrb[9].mxu0  ;;  %v2740_v4 = vadd.f32 %v1689_v50, %v2686_v32 }
 0x207   : > { %v1690_v53 = vpop.f32.mrb[10].mxu0  ;;  %v2748_v7 = vadd.f32 %v2686_v32, %v619_v51 }
 0x208   : > { %664 = vadd.xlane.f32.xlu1 %v2713_v49  ;;  %v622_v54 = vpop.f32.mrb[11].mxu0  ;;  %v2737_v3 = vadd.f32 %v1690_v53, %v2686_v32  ;;  %v708_v10 = vmul.f32 %v2740_v4, %v2740_v4 }
 0x209   : > { %662 = vadd.xlane.f32.xlu0 %v2716_v52  ;;  %v2745_v6 = vadd.f32 %v2686_v32, %v622_v54  ;;  %v706_v13 = vmul.f32 %v2748_v7, %v2748_v7 }
 0x20a   : > { %v709_v9 = vmul.f32 %v2737_v3, %v2737_v3 }
 0x20b   : > { %v707_v12 = vmul.f32 %v2745_v6, %v2745_v6 }
 0x20c   : > { %660 = vadd.xlane.f32.xlu1 %v2721_v55 }
 0x20d   : > { %658 = vadd.xlane.f32.xlu0 %v2724_v56  ;;  %v1693_v57 = vpop.f32.mrb[12].mxu0 }
 0x20e   : > { %v635_v59 = vpop.f32.mrb[13].mxu0  ;;  %v2764_v16 = vadd.f32 %v1693_v57, %v2686_v32 }
 0x20f   : > { %v1694_v61 = vpop.f32.mrb[14].mxu0  ;;  %v2772_v19 = vadd.f32 %v2686_v32, %v635_v59 }
 0x210   : > { %728 = vadd.xlane.f32.xlu1 %v705_v58  ;;  %v638_v63 = vpop.f32.mrb[15].mxu0  ;;  %v2761_v15 = vadd.f32 %v1694_v61, %v2686_v32  ;;  %v712_v24 = vmul.f32 %v2764_v16, %v2764_v16 }
 0x211   : > { %726 = vadd.xlane.f32.xlu0 %v704_v60  ;;  %v2769_v18 = vadd.f32 %v2686_v32, %v638_v63  ;;  %v710_v22 = vmul.f32 %v2772_v19, %v2772_v19 }
 0x212   : > { %v713_v23 = vmul.f32 %v2761_v15, %v2761_v15 }
 0x213   : > { %v711_v21 = vmul.f32 %v2769_v18, %v2769_v18 }
 0x214   : > { %724 = vadd.xlane.f32.xlu1 %v703_v0 }
 0x215   : > { %722 = vadd.xlane.f32.xlu0 %v702_v1 }
 0x218   : > { %672 = vadd.xlane.f32.xlu1 %v2737_v3 }
 0x219   : > { %670 = vadd.xlane.f32.xlu0 %v2740_v4 }
 0x21c   : > { %668 = vadd.xlane.f32.xlu1 %v2745_v6 }
 0x21d   : > { %666 = vadd.xlane.f32.xlu0 %v2748_v7 }
 0x220   : > { %736 = vadd.xlane.f32.xlu1 %v709_v9 }
 0x221   : > { %734 = vadd.xlane.f32.xlu0 %v708_v10 }
 0x224   : > { %732 = vadd.xlane.f32.xlu1 %v707_v12 }
 0x225   : > { %730 = vadd.xlane.f32.xlu0 %v706_v13 }
 0x228   : > { %680 = vadd.xlane.f32.xlu1 %v2761_v15 }
 0x229   : > { %678 = vadd.xlane.f32.xlu0 %v2764_v16 }
 0x22c   : > { %676 = vadd.xlane.f32.xlu1 %v2769_v18 }
 0x22d   : > { %674 = vadd.xlane.f32.xlu0 %v2772_v19 }
 0x230   : > { %740 = vadd.xlane.f32.xlu1 %v711_v21 }
 0x231   : > { %738 = vadd.xlane.f32.xlu0 %v710_v22 }
 0x234   : > { %744 = vadd.xlane.f32.xlu1 %v713_v23 }
 0x235   : > { %742 = vadd.xlane.f32.xlu0 %v712_v24 }
 0x285   : > { %v655_v25 = vpop.xlane.xlu1 %654 }
 0x286   : > { %v651_v26 = vpop.xlane.xlu0 %650  ;;  %v684_v27 = vmul.f32 0.0078125, %v655_v25 }
 0x287   : > { %v2784_v41 = vmul.f32 0.0078125, %v651_v26 }
 0x288   : > { %v764_v31 = vmul.f32 %v684_v27, %v684_v27  ;;  %v812_v13 = vsub.f32 %v2689_v34, %v684_v27 }
 0x289   : > { %v657_v28 = vpop.xlane.xlu1 %656  ;;  %v762_v54 = vmul.f32 %v2784_v41, %v2784_v41 }
 0x28a   : > { %v685_v29 = vmul.f32 0.0078125, %v657_v28  ;;  %v719_v30 = vpop.xlane.xlu0 %718 }
 0x28b   : > { %v748_v32 = vmul.f32 0.0078125, %v719_v30 }
 0x28c   : > { %v765_v37 = vmul.f32 %v685_v29, %v685_v29  ;;  %v813_v22 = vsub.f32 %v2697_v39, %v685_v29 }
 0x28d   : > { %v780_v33 = vsub.f32 %v748_v32, %v764_v31  ;;  %v721_v35 = vpop.xlane.xlu1 %720 }
 0x28e   : > { %v749_v38 = vmul.f32 0.0078125, %v721_v35  ;;  %v653_v40 = vpop.xlane.xlu0 %652 }
 0x28f   : > { %v796_v43 = vmax.f32 %v780_v33, 0.0  ;;  %v2786_v44 = vmul.f32 0.0078125, %v653_v40 }
 0x290   : > { %v781_v45 = vsub.f32 %v749_v38, %v765_v37  ;;  %v2810_v37 = vld [vmem:[#allocation8] ss:$0 sm:$0xff] }
 0x291   : > { %v828_v46 = vadd.f32 1e-05, %v796_v43  ;;  %v763_v47 = vmul.f32 %v2786_v44, %v2786_v44  ;;  %v717_v48 = vpop.xlane.xlu1 %716  ;;  %v811_v32 = vsub.f32 %v2703_v42, %v2786_v44 }
 0x292   : > { %v797_v50 = vmax.f32 %v781_v45, 0.0  ;;  %v747_v51 = vmul.f32 0.0078125, %v717_v48  ;;  %v715_v53 = vpop.xlane.xlu0 %714 }
 0x293   : > { %v746_v57 = vmul.f32 0.0078125, %v715_v53  ;;  %1876 = vrsqrt.f32 %v828_v46 }
 0x294   : > { %v829_v58 = vadd.f32 1e-05, %v797_v50  ;;  %v779_v59 = vsub.f32 %v747_v51, %v763_v47  ;;  %v810_v47 = vsub.f32 %v2692_v36, %v2784_v41 }
 0x295   : > { %v778_v60 = vsub.f32 %v746_v57, %v762_v54  ;;  %v665_v61 = vpop.xlane.xlu1 %664 }
 0x296   : > { %1878 = vrsqrt.f32 %v829_v58  ;;  %v795_v62 = vmax.f32 %v779_v59, 0.0  ;;  %v663_v63 = vpop.xlane.xlu0 %662  ;;  %v2792_v8 = vmul.f32 0.0078125, %v665_v61  ;;  %v2818_v61 = vld [vmem:[#allocation10] ss:$0 sm:$0xff] }
 0x297   : > { %v794_v0 = vmax.f32 %v778_v60, 0.0  ;;  %v2794_v10 = vmul.f32 0.0078125, %v663_v63 }
 0x298   : > { %v827_v1 = vadd.f32 1e-05, %v795_v62  ;;  %v769_v14 = vmul.f32 %v2792_v8, %v2792_v8 }
 0x299   : > { %v826_v2 = vadd.f32 1e-05, %v794_v0  ;;  %v661_v5 = vpop.xlane.xlu1 %660  ;;  %v768_v23 = vmul.f32 %v2794_v10, %v2794_v10 }
 0x29a   : > { %1880 = vrsqrt.f32 %v827_v1  ;;  %v659_v9 = vpop.xlane.xlu0 %658  ;;  %v2799_v17 = vmul.f32 0.0078125, %v661_v5 }
 0x29b   : > { %1882 = vrsqrt.f32 %v826_v2  ;;  %v2804_v24 = vmul.f32 0.0078125, %v659_v9 }
 0x29c   : > { %v767_v33 = vmul.f32 %v2799_v17, %v2799_v17 }
 0x29d   : > { %v729_v11 = vpop.xlane.xlu1 %728  ;;  %v1877_v12 = vpop.eup %1876  ;;  %v766_v38 = vmul.f32 %v2804_v24, %v2804_v24 }
 0x29e   : > { %v753_v20 = vmul.f32 0.0078125, %v729_v11  ;;  %v727_v21 = vpop.xlane.xlu0 %726  ;;  %v860_v34 = vmul.f32 %v1877_v12, %v812_v13 }
 0x29f   : > { %v752_v25 = vmul.f32 0.0078125, %v727_v21 }
 0x2a0   : > { %v1879_v26 = vpop.eup %1878  ;;  %v785_v28 = vsub.f32 %v753_v20, %v769_v14  ;;  %v883_v57 = vmul.f32 %v2810_v37, %v860_v34 }
 0x2a1   : > { %v784_v30 = vsub.f32 %v752_v25, %v768_v23  ;;  %v725_v31 = vpop.xlane.xlu1 %724  ;;  %v861_v27 = vmul.f32 %v1879_v26, %v813_v22  ;;  %v817_v23 = vsub.f32 %v2713_v49, %v2792_v8  ;;  %v816_v49 = vsub.f32 %v2716_v52, %v2794_v10 }
 0x2a2   : > { %v801_v35 = vmax.f32 %v785_v28, 0.0  ;;  %v751_v39 = vmul.f32 0.0078125, %v725_v31  ;;  %v723_v29 = vpop.xlane.xlu0 %722  ;;  %v906_v9 = vadd.f32 %v2818_v61, %v883_v57 }
 0x2a3   : > { %v800_v40 = vmax.f32 %v784_v30, 0.0  ;;  %v750_v43 = vmul.f32 0.0078125, %v723_v29  ;;  %v884_v45 = vmul.f32 %v2810_v37, %v861_v27 }
 0x2a4   : > { %v1881_v46 = vpop.eup %1880  ;;  %v833_v42 = vadd.f32 1e-05, %v801_v35  ;;  %v783_v44 = vsub.f32 %v751_v39, %v767_v33  ;;  %v922_v26 = vmax.f32 %v906_v9, 0.0 }
 0x2a5   : > { %v1883_v48 = vpop.eup %1882  ;;  %v832_v50 = vadd.f32 1e-05, %v800_v40  ;;  %v782_v51 = vsub.f32 %v750_v43, %v766_v38  ;;  %v673_v53 = vpop.xlane.xlu1 %672  ;;  %v859_v54 = vmul.f32 %v1881_v46, %v811_v32  ;;  %v907_v36 = vadd.f32 %v2818_v61, %v884_v45 }
 0x2a6   : > { %1884 = vrsqrt.f32 %v833_v42  ;;  %v799_v58 = vmax.f32 %v783_v44, 0.0  ;;  %v671_v59 = vpop.xlane.xlu0 %670  ;;  %v858_v60 = vmul.f32 %v1883_v48, %v810_v47  ;;  %v2825_v11 = vmul.f32 0.0078125, %v673_v53 }
 0x2a7   : > { %1886 = vrsqrt.f32 %v832_v50  ;;  %v798_v62 = vmax.f32 %v782_v51, 0.0  ;;  %v882_v63 = vmul.f32 %v2810_v37, %v859_v54  ;;  %v2828_v14 = vmul.f32 0.0078125, %v671_v59 }
 0x2a8   : > { %v831_v41 = vadd.f32 1e-05, %v799_v58  ;;  %v881_v0 = vmul.f32 %v2810_v37, %v858_v60  ;;  %v923_v21 = vmax.f32 %v907_v36, 0.0  ;;  %v773_v28 = vmul.f32 %v2825_v11, %v2825_v11 }
 0x2a9   : > { %v830_v1 = vadd.f32 1e-05, %v798_v62  ;;  %v669_v2 = vpop.xlane.xlu1 %668  ;;  %v905_v5 = vadd.f32 %v2818_v61, %v882_v63  ;;  %v772_v32 = vmul.f32 %v2828_v14, %v2828_v14  ;;  %v815_v40 = vsub.f32 %v2721_v55, %v2799_v17 }
 0x2aa   : > { %1888 = vrsqrt.f32 %v831_v41  ;;  %v667_v12 = vpop.xlane.xlu0 %666  ;;  %v904_v13 = vadd.f32 %v2818_v61, %v881_v0  ;;  %v2834_v30 = vmul.f32 0.0078125, %v669_v2  ;;  %v937_v39 = vpack.c.bf16 %v923_v21, %v922_v26 }
 0x2ab   : > { %1890 = vrsqrt.f32 %v830_v1  ;;  %v921_v20 = vmax.f32 %v905_v5, 0.0  ;;  %v2838_v33 = vmul.f32 0.0078125, %v667_v12  ;;  %v814_v55 = vsub.f32 %v2724_v56, %v2804_v24 }
 0x2ac   : > { %v920_v22 = vmax.f32 %v904_v13, 0.0  ;;  %v771_v47 = vmul.f32 %v2834_v30, %v2834_v30 }
 0x2ad   : > { %v737_v25 = vpop.xlane.xlu1 %736  ;;  %v770_v52 = vmul.f32 %v2838_v33, %v2838_v33 }
 0x2ae   : > { %v757_v31 = vmul.f32 0.0078125, %v737_v25  ;;  %v735_v34 = vpop.xlane.xlu0 %734  ;;  %v936_v27 = vpack.c.bf16 %v921_v20, %v920_v22 }
 0x2af   : > { %v756_v35 = vmul.f32 0.0078125, %v735_v34 }
 0x2b0   : > { %v1885_v29 = vpop.eup %1884  ;;  %v789_v8 = vsub.f32 %v757_v31, %v773_v28  ;;  %1711 = vmatprep.mubr.bf16.mxu1 %v936_v27 }
 0x2b1   : > { %v1887_v38 = vpop.eup %1886  ;;  %v788_v43 = vsub.f32 %v756_v35, %v772_v32  ;;  %v733_v45 = vpop.xlane.xlu1 %732  ;;  %1712 = vmatmul.mubr.bf16.vlgmr.msra.gmra.mrb[0].mxu1 %v937_v39  ;;  %v865_v46 = vmul.f32 %v1885_v29, %v817_v23  ;;  %v821_v32 = vsub.f32 %v2737_v3, %v2825_v11  ;;  %v820_v3 = vsub.f32 %v2740_v4, %v2828_v14 }
 0x2b2   : > { %v805_v42 = vmax.f32 %v789_v8, 0.0  ;;  %v755_v44 = vmul.f32 0.0078125, %v733_v45  ;;  %v731_v48 = vpop.xlane.xlu0 %730  ;;  %v864_v50 = vmul.f32 %v1887_v38, %v816_v49 }
 0x2b3   : > { %v804_v10 = vmax.f32 %v788_v43, 0.0  ;;  %v754_v51 = vmul.f32 0.0078125, %v731_v48  ;;  %v888_v53 = vmul.f32 %v2810_v37, %v865_v46 }
 0x2b4   : > { %v1889_v54 = vpop.eup %1888  ;;  %v837_v17 = vadd.f32 1e-05, %v805_v42  ;;  %v787_v57 = vsub.f32 %v755_v44, %v771_v47  ;;  %v887_v1 = vmul.f32 %v2810_v37, %v864_v50  ;;  %v819_v44 = vsub.f32 %v2745_v6, %v2834_v30 }
 0x2b5   : > { %v1891_v58 = vpop.eup %1890  ;;  %v836_v59 = vadd.f32 1e-05, %v804_v10  ;;  %v786_v60 = vsub.f32 %v754_v51, %v770_v52  ;;  %v681_v62 = vpop.xlane.xlu1 %680  ;;  %v863_v63 = vmul.f32 %v1889_v54, %v815_v40  ;;  %v911_v9 = vadd.f32 %v2818_v61, %v888_v53 }
 0x2b6   : > { %1892 = vrsqrt.f32 %v837_v17  ;;  %v803_v36 = vmax.f32 %v787_v57, 0.0  ;;  %v679_v41 = vpop.xlane.xlu0 %678  ;;  %v862_v0 = vmul.f32 %v1891_v58, %v814_v55  ;;  %v910_v25 = vadd.f32 %v2818_v61, %v887_v1 }
 0x2b7   : > { %1894 = vrsqrt.f32 %v836_v59  ;;  %v802_v2 = vmax.f32 %v786_v60, 0.0  ;;  %v886_v5 = vmul.f32 %v2810_v37, %v863_v63  ;;  %v927_v31 = vmax.f32 %v911_v9, 0.0 }
 0x2b8   : > { %v835_v56 = vadd.f32 1e-05, %v803_v36  ;;  %v885_v24 = vmul.f32 %v2810_v37, %v862_v0  ;;  %v926_v27 = vmax.f32 %v910_v25, 0.0  ;;  %v2864_v39 = vmul.f32 0.0078125, %v681_v62 }
 0x2b9   : > { %v834_v12 = vadd.f32 1e-05, %v802_v2  ;;  %v677_v13 = vpop.xlane.xlu1 %676  ;;  %v909_v20 = vadd.f32 %v2818_v61, %v886_v5  ;;  %v2868_v40 = vmul.f32 0.0078125, %v679_v41  ;;  %v818_v6 = vsub.f32 %v2748_v7, %v2838_v33 }
 0x2ba   : > { %1896 = vrsqrt.f32 %v835_v56  ;;  %v2856_v21 = vmul.f32 0.0078125, %v677_v13  ;;  %v675_v22 = vpop.xlane.xlu0 %674  ;;  %v908_v23 = vadd.f32 %v2818_v61, %v885_v24  ;;  %v939_v46 = vpack.c.bf16 %v927_v31, %v926_v27 }
 0x2bb   : > { %1898 = vrsqrt.f32 %v834_v12  ;;  %v2860_v26 = vmul.f32 0.0078125, %v675_v22  ;;  %v925_v28 = vmax.f32 %v909_v20, 0.0  ;;  %v777_v10 = vmul.f32 %v2864_v39, %v2864_v39 }
 0x2bc   : > { %v924_v34 = vmax.f32 %v908_v23, 0.0  ;;  %v775_v29 = vmul.f32 %v2856_v21, %v2856_v21  ;;  %v776_v4 = vmul.f32 %v2868_v40, %v2868_v40  ;;  %v823_v31 = vsub.f32 %v2769_v18, %v2856_v21 }
 0x2bd   : > { %v741_v35 = vpop.xlane.xlu1 %740  ;;  %v774_v43 = vmul.f32 %v2860_v26, %v2860_v26 }
 0x2be   : > { %v759_v49 = vmul.f32 0.0078125, %v741_v35  ;;  %v739_v8 = vpop.xlane.xlu0 %738  ;;  %v938_v38 = vpack.c.bf16 %v925_v28, %v924_v34 }
 0x2bf   : > { %v758_v45 = vmul.f32 0.0078125, %v739_v8  ;;  %v825_v8 = vsub.f32 %v2761_v15, %v2864_v39 }
 0x2c0   : > { %v1893_v47 = vpop.eup %1892  ;;  %v791_v11 = vsub.f32 %v759_v49, %v775_v29  ;;  %1715 = vmatprep.mubr.bf16.mxu1 %v938_v38 }
 0x2c1   : > { %v1895_v42 = vpop.eup %1894  ;;  %v790_v48 = vsub.f32 %v758_v45, %v774_v43  ;;  %v745_v50 = vpop.xlane.xlu1 %744  ;;  %1716 = vmatmul.mubr.bf16.gmra.mrb[4].mxu1 %v939_v46  ;;  %v869_v52 = vmul.f32 %v1893_v47, %v821_v32  ;;  %v822_v32 = vsub.f32 %v2772_v19, %v2860_v26  ;;  %v824_v45 = vsub.f32 %v2764_v16, %v2868_v40 }
 0x2c2   : > { %v807_v51 = vmax.f32 %v791_v11, 0.0  ;;  %v761_v53 = vmul.f32 0.0078125, %v745_v50  ;;  %v743_v54 = vpop.xlane.xlu0 %742  ;;  %v868_v55 = vmul.f32 %v1895_v42, %v820_v3 }
 0x2c3   : > { %v806_v14 = vmax.f32 %v790_v48, 0.0  ;;  %v760_v17 = vmul.f32 0.0078125, %v743_v54  ;;  %v892_v57 = vmul.f32 %v2810_v37, %v869_v52  ;;  %v2906_v52 = vld [vmem:[#allocation13] ss:$0 sm:$0xff] }
 0x2c4   : > { %v1897_v58 = vpop.eup %1896  ;;  %v839_v30 = vadd.f32 1e-05, %v807_v51  ;;  %v793_v59 = vsub.f32 %v761_v53, %v777_v10  ;;  %v891_v60 = vmul.f32 %v2810_v37, %v868_v55 }
 0x2c5   : > { %v1899_v62 = vpop.eup %1898  ;;  %v838_v63 = vadd.f32 1e-05, %v806_v14  ;;  %v792_v36 = vsub.f32 %v760_v17, %v776_v4  ;;  %v867_v41 = vmul.f32 %v1897_v58, %v819_v44  ;;  %v915_v2 = vadd.f32 %v2818_v61, %v892_v57 }
 0x2c6   : > { %1900 = vrsqrt.f32 %v839_v30  ;;  %v809_v0 = vmax.f32 %v793_v59, 0.0  ;;  %v866_v1 = vmul.f32 %v1899_v62, %v818_v6  ;;  %v914_v56 = vadd.f32 %v2818_v61, %v891_v60 }
 0x2c7   : > { %1902 = vrsqrt.f32 %v838_v63  ;;  %v808_v5 = vmax.f32 %v792_v36, 0.0  ;;  %v890_v9 = vmul.f32 %v2810_v37, %v867_v41  ;;  %v931_v23 = vmax.f32 %v915_v2, 0.0 }
 0x2c8   : > { %v841_v7 = vadd.f32 1e-05, %v809_v0  ;;  %v889_v33 = vmul.f32 %v2810_v37, %v866_v1  ;;  %v930_v22 = vmax.f32 %v914_v56, 0.0 }
 0x2c9   : > { %v840_v24 = vadd.f32 1e-05, %v808_v5  ;;  %v913_v12 = vadd.f32 %v2818_v61, %v890_v9 }
 0x2ca   : > { %1904 = vrsqrt.f32 %v841_v7  ;;  %v912_v13 = vadd.f32 %v2818_v61, %v889_v33  ;;  %v941_v34 = vpack.c.bf16 %v931_v23, %v930_v22 }
 0x2cb   : > { %1906 = vrsqrt.f32 %v840_v24  ;;  %v929_v20 = vmax.f32 %v913_v12, 0.0 }
 0x2cc   : > { %v928_v25 = vmax.f32 %v912_v13, 0.0 }
 0x2ce   : > { %v940_v28 = vpack.c.bf16 %v929_v20, %v928_v25 }
 0x2d0   : > { %v1901_v27 = vpop.eup %1900  ;;  %1719 = vmatprep.mubr.bf16.mxu1 %v940_v28 }
 0x2d1   : > { %v1903_v35 = vpop.eup %1902  ;;  %1720 = vmatmul.mubr.bf16.gmra.mrb[8].mxu1 %v941_v34  ;;  %v871_v29 = vmul.f32 %v1901_v27, %v823_v31 }
 0x2d2   : > { %v870_v49 = vmul.f32 %v1903_v35, %v822_v32 }
 0x2d3   : > { %v894_v38 = vmul.f32 %v2810_v37, %v871_v29 }
 0x2d4   : > { %v1905_v43 = vpop.eup %1904  ;;  %v893_v18 = vmul.f32 %v2810_v37, %v870_v49 }
 0x2d5   : > { %v1907_v21 = vpop.eup %1906  ;;  %v917_v46 = vadd.f32 %v2818_v61, %v894_v38  ;;  %v873_v19 = vmul.f32 %v1905_v43, %v825_v8 }
 0x2d6   : > { %v916_v26 = vadd.f32 %v2818_v61, %v893_v18  ;;  %v872_v47 = vmul.f32 %v1907_v21, %v824_v45 }
 0x2d7   : > { %v933_v3 = vmax.f32 %v917_v46, 0.0  ;;  %v896_v11 = vmul.f32 %v2810_v37, %v873_v19 }
 0x2d8   : > { %v932_v42 = vmax.f32 %v916_v26, 0.0  ;;  %v895_v15 = vmul.f32 %v2810_v37, %v872_v47 }
 0x2d9   : > { %v919_v39 = vadd.f32 %v2818_v61, %v896_v11 }
 0x2da   : > { %v942_v44 = vpack.c.bf16 %v933_v3, %v932_v42  ;;  %v918_v16 = vadd.f32 %v2818_v61, %v895_v15 }
 0x2db   : > { %v935_v40 = vmax.f32 %v919_v39, 0.0 }
 0x2dc   : > { %1723 = vmatprep.mubr.bf16.mxu1 %v942_v44  ;;  %v934_v48 = vmax.f32 %v918_v16, 0.0 }
 0x2de   : > { %v943_v50 = vpack.c.bf16 %v935_v40, %v934_v48 }
 0x2e0   : > { %1724 = vmatmul.mubr.bf16.gmra.mrb[12].mxu1 %v943_v50 }
 0x384   : > { %v1713_v10 = vpop.f32.mrb[0].mxu1 }
 0x385   : > { %v2909_v51 = vadd.f32 %v1713_v10, %v2906_v52  ;;  %v1049_v53 = vpop.f32.mrb[1].mxu1 }
 0x386   : > { %v1714_v54 = vpop.f32.mrb[2].mxu1  ;;  %v2916_v61 = vadd.f32 %v2906_v52, %v1049_v53 }
 0x387   : > { %v2912_v37 = vadd.f32 %v1714_v54, %v2906_v52  ;;  %1116 = vadd.xlane.f32.xlu0 %v2909_v51  ;;  %v1052_v55 = vpop.f32.mrb[3].mxu1  ;;  %v1162_v14 = vmul.f32 %v2909_v51, %v2909_v51 }
 0x388   : > { %v2920_v4 = vadd.f32 %v2906_v52, %v1052_v55  ;;  %v1160_v57 = vmul.f32 %v2916_v61, %v2916_v61 }
 0x389   : > { %1118 = vadd.xlane.f32.xlu1 %v2912_v37  ;;  %v1163_v17 = vmul.f32 %v2912_v37, %v2912_v37 }
 0x38a   : > { %v1161_v58 = vmul.f32 %v2920_v4, %v2920_v4 }
 0x38b   : > { %1112 = vadd.xlane.f32.xlu0 %v2916_v61 }
 0x38d   : > { %1114 = vadd.xlane.f32.xlu1 %v2920_v4 }
 0x38f   : > { %1180 = vadd.xlane.f32.xlu0 %v1162_v14 }
 0x391   : > { %1182 = vadd.xlane.f32.xlu1 %v1163_v17 }
 0x393   : > { %1176 = vadd.xlane.f32.xlu0 %v1160_v57 }
 0x394   : > { %v1717_v6 = vpop.f32.mrb[4].mxu1 }
 0x395   : > { %v2933_v30 = vadd.f32 %v1717_v6, %v2906_v52  ;;  %1178 = vadd.xlane.f32.xlu1 %v1161_v58  ;;  %v1065_v59 = vpop.f32.mrb[5].mxu1 }
 0x396   : > { %v1718_v60 = vpop.f32.mrb[6].mxu1  ;;  %v2940_v36 = vadd.f32 %v2906_v52, %v1065_v59 }
 0x397   : > { %v2936_v62 = vadd.f32 %v1718_v60, %v2906_v52  ;;  %1124 = vadd.xlane.f32.xlu0 %v2933_v30  ;;  %v1068_v63 = vpop.f32.mrb[7].mxu1  ;;  %v1166_v0 = vmul.f32 %v2933_v30, %v2933_v30 }
 0x398   : > { %v2944_v41 = vadd.f32 %v2906_v52, %v1068_v63  ;;  %v1164_v2 = vmul.f32 %v2940_v36, %v2940_v36 }
 0x399   : > { %1126 = vadd.xlane.f32.xlu1 %v2936_v62  ;;  %v1167_v1 = vmul.f32 %v2936_v62, %v2936_v62 }
 0x39a   : > { %v1165_v5 = vmul.f32 %v2944_v41, %v2944_v41 }
 0x39b   : > { %1120 = vadd.xlane.f32.xlu0 %v2940_v36 }
 0x39d   : > { %1122 = vadd.xlane.f32.xlu1 %v2944_v41 }
 0x39f   : > { %1188 = vadd.xlane.f32.xlu0 %v1166_v0 }
 0x3a1   : > { %1190 = vadd.xlane.f32.xlu1 %v1167_v1 }
 0x3a3   : > { %1184 = vadd.xlane.f32.xlu0 %v1164_v2 }
 0x3a4   : > { %v1721_v9 = vpop.f32.mrb[8].mxu1 }
 0x3a5   : > { %v2957_v56 = vadd.f32 %v1721_v9, %v2906_v52  ;;  %1186 = vadd.xlane.f32.xlu1 %v1165_v5  ;;  %v1081_v7 = vpop.f32.mrb[9].mxu1 }
 0x3a6   : > { %v1722_v33 = vpop.f32.mrb[10].mxu1  ;;  %v2964_v13 = vadd.f32 %v2906_v52, %v1081_v7 }
 0x3a7   : > { %v2960_v24 = vadd.f32 %v1722_v33, %v2906_v52  ;;  %1132 = vadd.xlane.f32.xlu0 %v2957_v56  ;;  %v1084_v12 = vpop.f32.mrb[11].mxu1  ;;  %v1170_v22 = vmul.f32 %v2957_v56, %v2957_v56 }
 0x3a8   : > { %v2968_v20 = vadd.f32 %v2906_v52, %v1084_v12  ;;  %v1168_v25 = vmul.f32 %v2964_v13, %v2964_v13 }
 0x3a9   : > { %1134 = vadd.xlane.f32.xlu1 %v2960_v24  ;;  %v1171_v23 = vmul.f32 %v2960_v24, %v2960_v24 }
 0x3aa   : > { %v1169_v31 = vmul.f32 %v2968_v20, %v2968_v20 }
 0x3ab   : > { %1128 = vadd.xlane.f32.xlu0 %v2964_v13 }
 0x3ad   : > { %1130 = vadd.xlane.f32.xlu1 %v2968_v20 }
 0x3af   : > { %1196 = vadd.xlane.f32.xlu0 %v1170_v22 }
 0x3b1   : > { %1198 = vadd.xlane.f32.xlu1 %v1171_v23 }
 0x3b3   : > { %1192 = vadd.xlane.f32.xlu0 %v1168_v25  ;;  %v1725_v28 = vpop.f32.mrb[12].mxu1 }
 0x3b4   : > { %v2981_v34 = vadd.f32 %v1725_v28, %v2906_v52  ;;  %v1097_v27 = vpop.f32.mrb[13].mxu1 }
 0x3b5   : > { %1194 = vadd.xlane.f32.xlu1 %v1169_v31  ;;  %v1726_v32 = vpop.f32.mrb[14].mxu1  ;;  %v2988_v49 = vadd.f32 %v2906_v52, %v1097_v27 }
 0x3b6   : > { %v2984_v35 = vadd.f32 %v1726_v32, %v2906_v52  ;;  %v1100_v29 = vpop.f32.mrb[15].mxu1  ;;  %v1174_v45 = vmul.f32 %v2981_v34, %v2981_v34 }
 0x3b7   : > { %1140 = vadd.xlane.f32.xlu0 %v2981_v34  ;;  %v2992_v8 = vadd.f32 %v2906_v52, %v1100_v29  ;;  %v1172_v38 = vmul.f32 %v2988_v49, %v2988_v49 }
 0x3b8   : > { %v1175_v18 = vmul.f32 %v2984_v35, %v2984_v35 }
 0x3b9   : > { %1142 = vadd.xlane.f32.xlu1 %v2984_v35  ;;  %v1173_v43 = vmul.f32 %v2992_v8, %v2992_v8 }
 0x3bb   : > { %1136 = vadd.xlane.f32.xlu0 %v2988_v49 }
 0x3bd   : > { %1138 = vadd.xlane.f32.xlu1 %v2992_v8 }
 0x3bf   : > { %1200 = vadd.xlane.f32.xlu0 %v1172_v38 }
 0x3c1   : > { %1202 = vadd.xlane.f32.xlu1 %v1173_v43 }
 0x3c3   : > { %1204 = vadd.xlane.f32.xlu0 %v1174_v45  ;;  %v3023_v45 = vld [vmem:[#allocation14] ss:$0 sm:$0xff] }
 0x3c5   : > { %1206 = vadd.xlane.f32.xlu1 %v1175_v18 }
 0x414   : > { %v1117_v21 = vpop.xlane.xlu0 %1116 }
 0x415   : > { %v1146_v26 = vmul.f32 0.0078125, %v1117_v21 }
 0x416   : > { %v1119_v46 = vpop.xlane.xlu1 %1118 }
 0x417   : > { %v1147_v3 = vmul.f32 0.0078125, %v1119_v46  ;;  %v1226_v42 = vmul.f32 %v1146_v26, %v1146_v26  ;;  %v1274_v32 = vsub.f32 %v2909_v51, %v1146_v26 }
 0x418   : > { %v1113_v19 = vpop.xlane.xlu0 %1112 }
 0x419   : > { %v3004_v15 = vmul.f32 0.0078125, %v1113_v19  ;;  %v1227_v40 = vmul.f32 %v1147_v3, %v1147_v3  ;;  %v1275_v19 = vsub.f32 %v2912_v37, %v1147_v3 }
 0x41a   : > { %v1115_v47 = vpop.xlane.xlu1 %1114 }
 0x41b   : > { %v3006_v44 = vmul.f32 0.0078125, %v1115_v47  ;;  %v1224_v10 = vmul.f32 %v3004_v15, %v3004_v15 }
 0x41c   : > { %v1181_v11 = vpop.xlane.xlu0 %1180 }
 0x41d   : > { %v1210_v39 = vmul.f32 0.0078125, %v1181_v11  ;;  %v1225_v14 = vmul.f32 %v3006_v44, %v3006_v44 }
 0x41e   : > { %v1183_v16 = vpop.xlane.xlu1 %1182 }
 0x41f   : > { %v1242_v48 = vsub.f32 %v1210_v39, %v1226_v42  ;;  %v1211_v50 = vmul.f32 0.0078125, %v1183_v16  ;;  %v3028_v39 = vld [vmem:[#allocation16] ss:$0 sm:$0xff] }
 0x420   : > { %v1177_v52 = vpop.xlane.xlu0 %1176 }
 0x421   : > { %v1258_v53 = vmax.f32 %v1242_v48, 0.0  ;;  %v1243_v54 = vsub.f32 %v1211_v50, %v1227_v40  ;;  %v1208_v55 = vmul.f32 0.0078125, %v1177_v52  ;;  %v1272_v48 = vsub.f32 %v2916_v61, %v3004_v15 }
 0x422   : > { %v1179_v17 = vpop.xlane.xlu1 %1178 }
 0x423   : > { %v1290_v57 = vadd.f32 1e-05, %v1258_v53  ;;  %v1259_v58 = vmax.f32 %v1243_v54, 0.0  ;;  %v1240_v6 = vsub.f32 %v1208_v55, %v1224_v10  ;;  %v1209_v59 = vmul.f32 0.0078125, %v1179_v17 }
 0x424   : > { %v1125_v60 = vpop.xlane.xlu0 %1124  ;;  %v1273_v17 = vsub.f32 %v2920_v4, %v3006_v44 }
 0x425   : > { %1908 = vrsqrt.f32 %v1290_v57  ;;  %v1291_v63 = vadd.f32 1e-05, %v1259_v58  ;;  %v1256_v0 = vmax.f32 %v1240_v6, 0.0  ;;  %v1241_v1 = vsub.f32 %v1209_v59, %v1225_v14 }
 0x426   : > { %v1127_v2 = vpop.xlane.xlu1 %1126  ;;  %v3012_v12 = vmul.f32 0.0078125, %v1125_v60 }
 0x427   : > { %1910 = vrsqrt.f32 %v1291_v63  ;;  %v1288_v5 = vadd.f32 1e-05, %v1256_v0  ;;  %v1257_v9 = vmax.f32 %v1241_v1, 0.0  ;;  %v3014_v23 = vmul.f32 0.0078125, %v1127_v2 }
 0x428   : > { %v1121_v7 = vpop.xlane.xlu0 %1120  ;;  %v1230_v28 = vmul.f32 %v3012_v12, %v3012_v12 }
 0x429   : > { %1912 = vrsqrt.f32 %v1288_v5  ;;  %v1289_v33 = vadd.f32 1e-05, %v1257_v9  ;;  %v3018_v31 = vmul.f32 0.0078125, %v1121_v7  ;;  %v1231_v18 = vmul.f32 %v3014_v23, %v3014_v23 }
 0x42a   : > { %v1123_v22 = vpop.xlane.xlu1 %1122 }
 0x42b   : > { %1914 = vrsqrt.f32 %v1289_v33  ;;  %v3021_v29 = vmul.f32 0.0078125, %v1123_v22  ;;  %v1228_v51 = vmul.f32 %v3018_v31, %v3018_v31 }
 0x42c   : > { %v1189_v25 = vpop.xlane.xlu0 %1188 }
 0x42d   : > { %v1214_v27 = vmul.f32 0.0078125, %v1189_v25  ;;  %v1229_v37 = vmul.f32 %v3021_v29, %v3021_v29 }
 0x42e   : > { %v1191_v38 = vpop.xlane.xlu1 %1190 }
 0x42f   : > { %v1909_v43 = vpop.eup %1908  ;;  %v1246_v21 = vsub.f32 %v1214_v27, %v1230_v28  ;;  %v1215_v46 = vmul.f32 0.0078125, %v1191_v38 }
 0x430   : > { %v1322_v47 = vmul.f32 %v1909_v43, %v1274_v32  ;;  %v1185_v11 = vpop.xlane.xlu0 %1184 }
 0x431   : > { %v1911_v42 = vpop.eup %1910  ;;  %v1262_v26 = vmax.f32 %v1246_v21, 0.0  ;;  %v1247_v16 = vsub.f32 %v1215_v46, %v1231_v18  ;;  %v1212_v40 = vmul.f32 0.0078125, %v1185_v11 }
 0x432   : > { %v1345_v50 = vmul.f32 %v3023_v45, %v1322_v47  ;;  %v1323_v52 = vmul.f32 %v1911_v42, %v1275_v19  ;;  %v1187_v3 = vpop.xlane.xlu1 %1186  ;;  %v1278_v47 = vsub.f32 %v2933_v30, %v3012_v12  ;;  %v1276_v30 = vsub.f32 %v2940_v36, %v3018_v31 }
 0x433   : > { %v1913_v10 = vpop.eup %1912  ;;  %v1294_v53 = vadd.f32 1e-05, %v1262_v26  ;;  %v1263_v54 = vmax.f32 %v1247_v16, 0.0  ;;  %v1244_v55 = vsub.f32 %v1212_v40, %v1228_v51  ;;  %v1213_v14 = vmul.f32 0.0078125, %v1187_v3 }
 0x434   : > { %v1368_v57 = vadd.f32 %v3028_v39, %v1345_v50  ;;  %v1346_v58 = vmul.f32 %v3023_v45, %v1323_v52  ;;  %v1320_v61 = vmul.f32 %v1913_v10, %v1272_v48  ;;  %v1133_v15 = vpop.xlane.xlu0 %1132  ;;  %v1279_v50 = vsub.f32 %v2936_v62, %v3014_v23 }
 0x435   : > { %v1915_v6 = vpop.eup %1914  ;;  %1916 = vrsqrt.f32 %v1294_v53  ;;  %v1295_v59 = vadd.f32 1e-05, %v1263_v54  ;;  %v1260_v60 = vmax.f32 %v1244_v55, 0.0  ;;  %v1245_v63 = vsub.f32 %v1213_v14, %v1229_v37 }
 0x436   : > { %v1384_v0 = vmax.f32 %v1368_v57, 0.0  ;;  %v1369_v1 = vadd.f32 %v3028_v39, %v1346_v58  ;;  %v1343_v2 = vmul.f32 %v3023_v45, %v1320_v61  ;;  %v1321_v5 = vmul.f32 %v1915_v6, %v1273_v17  ;;  %v1135_v9 = vpop.xlane.xlu1 %1134 }
 0x437   : > { %1918 = vrsqrt.f32 %v1295_v59  ;;  %v1292_v4 = vadd.f32 1e-05, %v1260_v60  ;;  %v1261_v44 = vmax.f32 %v1245_v63, 0.0  ;;  %v3052_v38 = vmul.f32 0.0078125, %v1133_v15 }
 0x438   : > { %1400 = vst [vmem:[%s3045_s16 + $0x10] sm:$0xff] %v1384_v0  ;;  %v1385_v7 = vmax.f32 %v1369_v1, 0.0  ;;  %v1366_v33 = vadd.f32 %v3028_v39, %v1343_v2  ;;  %v1344_v22 = vmul.f32 %v3023_v45, %v1321_v5  ;;  %v1129_v25 = vpop.xlane.xlu0 %1128  ;;  %v3054_v18 = vmul.f32 0.0078125, %v1135_v9 }
 0x439   : > { %1920 = vrsqrt.f32 %v1292_v4  ;;  %v1293_v28 = vadd.f32 1e-05, %v1261_v44  ;;  %v3057_v19 = vmul.f32 0.0078125, %v1129_v25  ;;  %v1234_v11 = vmul.f32 %v3052_v38, %v3052_v38 }
 0x43a   : > { %1401 = vst [vmem:[%s3045_s16 + $0x18] sm:$0xff] %v1385_v7  ;;  %v1382_v27 = vmax.f32 %v1366_v33, 0.0  ;;  %v1367_v32 = vadd.f32 %v3028_v39, %v1344_v22  ;;  %v1131_v43 = vpop.xlane.xlu1 %1130  ;;  %v1235_v16 = vmul.f32 %v3054_v18, %v3054_v18  ;;  %v1277_v55 = vsub.f32 %v2944_v41, %v3021_v29 }
 0x43b   : > { %1922 = vrsqrt.f32 %v1293_v28  ;;  %v3066_v40 = vmul.f32 0.0078125, %v1131_v43  ;;  %v1232_v12 = vmul.f32 %v3057_v19, %v3057_v19 }
 0x43c   : > { %1398 = vst [vmem:[%s3045_s16] sm:$0xff] %v1382_v27  ;;  %v1383_v21 = vmax.f32 %v1367_v32, 0.0  ;;  %v1197_v46 = vpop.xlane.xlu0 %1196 }
 0x43d   : > { %v1218_v42 = vmul.f32 0.0078125, %v1197_v46  ;;  %v1233_v58 = vmul.f32 %v3066_v40, %v3066_v40 }
 0x43e   : > { %1399 = vst [vmem:[%s3045_s16 + $0x8] sm:$0xff] %v1383_v21  ;;  %v1199_v51 = vpop.xlane.xlu1 %1198 }
 0x43f   : > { %v1917_v26 = vpop.eup %1916  ;;  %v1219_v48 = vmul.f32 0.0078125, %v1199_v51  ;;  %v1250_v37 = vsub.f32 %v1218_v42, %v1234_v11 }
 0x440   : > { %v1326_v52 = vmul.f32 %v1917_v26, %v1278_v47  ;;  %v1193_v3 = vpop.xlane.xlu0 %1192 }
 0x441   : > { %v1919_v10 = vpop.eup %1918  ;;  %v1251_v53 = vsub.f32 %v1219_v48, %v1235_v16  ;;  %v1216_v54 = vmul.f32 0.0078125, %v1193_v3  ;;  %v1266_v57 = vmax.f32 %v1250_v37, 0.0 }
 0x442   : > { %v1349_v14 = vmul.f32 %v3023_v45, %v1326_v52  ;;  %v1327_v17 = vmul.f32 %v1919_v10, %v1279_v50  ;;  %v1195_v62 = vpop.xlane.xlu1 %1194  ;;  %v1282_v10 = vsub.f32 %v2957_v56, %v3052_v38  ;;  %v1281_v56 = vsub.f32 %v2968_v20, %v3066_v40 }
 0x443   : > { %v1921_v23 = vpop.eup %1920  ;;  %v1267_v61 = vmax.f32 %v1251_v53, 0.0  ;;  %v1248_v15 = vsub.f32 %v1216_v54, %v1232_v12  ;;  %v1217_v36 = vmul.f32 0.0078125, %v1195_v62  ;;  %v1298_v60 = vadd.f32 1e-05, %v1266_v57 }
 0x444   : > { %v1372_v31 = vadd.f32 %v3028_v39, %v1349_v14  ;;  %v1350_v6 = vmul.f32 %v3023_v45, %v1327_v17  ;;  %v1324_v59 = vmul.f32 %v1921_v23, %v1276_v30  ;;  %v1141_v41 = vpop.xlane.xlu0 %1140  ;;  %v1283_v30 = vsub.f32 %v2960_v24, %v3054_v18 }
 0x445   : > { %v1923_v29 = vpop.eup %1922  ;;  %v1299_v63 = vadd.f32 1e-05, %v1267_v61  ;;  %v1264_v0 = vmax.f32 %v1248_v15, 0.0  ;;  %v1249_v1 = vsub.f32 %v1217_v36, %v1233_v58  ;;  %1924 = vrsqrt.f32 %v1298_v60 }
 0x446   : > { %v1388_v2 = vmax.f32 %v1372_v31, 0.0  ;;  %v1373_v5 = vadd.f32 %v3028_v39, %v1350_v6  ;;  %v1347_v9 = vmul.f32 %v3023_v45, %v1324_v59  ;;  %v1325_v4 = vmul.f32 %v1923_v29, %v1277_v55  ;;  %v1143_v44 = vpop.xlane.xlu1 %1142 }
 0x447   : > { %v1296_v7 = vadd.f32 1e-05, %v1264_v0  ;;  %v1265_v33 = vmax.f32 %v1249_v1, 0.0  ;;  %1926 = vrsqrt.f32 %v1299_v63  ;;  %v3093_v26 = vmul.f32 0.0078125, %v1141_v41 }
 0x448   : > { %1404 = vst [vmem:[%s3045_s16 + $0x30] sm:$0xff] %v1388_v2  ;;  %v1389_v22 = vmax.f32 %v1373_v5, 0.0  ;;  %v1370_v25 = vadd.f32 %v3028_v39, %v1347_v9  ;;  %v1348_v28 = vmul.f32 %v3023_v45, %v1325_v4  ;;  %v1137_v27 = vpop.xlane.xlu0 %1136  ;;  %v3104_v12 = vmul.f32 0.0078125, %v1143_v44 }
 0x449   : > { %1928 = vrsqrt.f32 %v1296_v7  ;;  %v1297_v32 = vadd.f32 1e-05, %v1265_v33  ;;  %v3088_v46 = vmul.f32 0.0078125, %v1137_v27  ;;  %v1238_v55 = vmul.f32 %v3093_v26, %v3093_v26 }
 0x44a   : > { %1405 = vst [vmem:[%s3045_s16 + $0x38] sm:$0xff] %v1389_v22  ;;  %v1386_v43 = vmax.f32 %v1370_v25, 0.0  ;;  %v1371_v21 = vadd.f32 %v3028_v39, %v1348_v28  ;;  %v1139_v47 = vpop.xlane.xlu1 %1138  ;;  %v1280_v23 = vsub.f32 %v2964_v13, %v3057_v19  ;;  %v1239_v59 = vmul.f32 %v3104_v12, %v3104_v12 }
 0x44b   : > { %1930 = vrsqrt.f32 %v1297_v32  ;;  %v3090_v11 = vmul.f32 0.0078125, %v1139_v47  ;;  %v1236_v16 = vmul.f32 %v3088_v46, %v3088_v46  ;;  %v1284_v27 = vsub.f32 %v2988_v49, %v3088_v46 }
 0x44c   : > { %1402 = vst [vmem:[%s3045_s16 + $0x20] sm:$0xff] %v1386_v43  ;;  %v1387_v42 = vmax.f32 %v1371_v21, 0.0  ;;  %v1201_v51 = vpop.xlane.xlu0 %1200 }
 0x44d   : > { %v1220_v48 = vmul.f32 0.0078125, %v1201_v51  ;;  %v1237_v52 = vmul.f32 %v3090_v11, %v3090_v11  ;;  %v1285_v43 = vsub.f32 %v2992_v8, %v3090_v11  ;;  %v1287_v8 = vsub.f32 %v2984_v35, %v3104_v12 }
 0x44e   : > { %1403 = vst [vmem:[%s3045_s16 + $0x28] sm:$0xff] %v1387_v42  ;;  %v1203_v50 = vpop.xlane.xlu1 %1202  ;;  %v1286_v42 = vsub.f32 %v2981_v34, %v3093_v26 }
 0x44f   : > { %v1252_v37 = vsub.f32 %v1220_v48, %v1236_v16  ;;  %v1221_v3 = vmul.f32 0.0078125, %v1203_v50  ;;  %v1925_v54 = vpop.eup %1924 }
 0x450   : > { %v1205_v53 = vpop.xlane.xlu0 %1204  ;;  %v1330_v38 = vmul.f32 %v1925_v54, %v1282_v10 }
 0x451   : > { %v1268_v14 = vmax.f32 %v1252_v37, 0.0  ;;  %v1253_v17 = vsub.f32 %v1221_v3, %v1237_v52  ;;  %v1222_v57 = vmul.f32 0.0078125, %v1205_v53  ;;  %v1927_v62 = vpop.eup %1926 }
 0x452   : > { %v1207_v58 = vpop.xlane.xlu1 %1206  ;;  %v1331_v18 = vmul.f32 %v1927_v62, %v1283_v30  ;;  %v1353_v31 = vmul.f32 %v3023_v45, %v1330_v38 }
 0x453   : > { %v1929_v24 = vpop.eup %1928  ;;  %v1300_v61 = vadd.f32 1e-05, %v1268_v14  ;;  %v1269_v15 = vmax.f32 %v1253_v17, 0.0  ;;  %v1254_v36 = vsub.f32 %v1222_v57, %v1238_v55  ;;  %v1223_v60 = vmul.f32 0.0078125, %v1207_v58 }
 0x454   : > { %v1328_v6 = vmul.f32 %v1929_v24, %v1280_v23  ;;  %v1354_v13 = vmul.f32 %v3023_v45, %v1331_v18  ;;  %v1376_v40 = vadd.f32 %v3028_v39, %v1353_v31 }
 0x455   : > { %v1931_v41 = vpop.eup %1930  ;;  %1932 = vrsqrt.f32 %v1300_v61  ;;  %v1301_v20 = vadd.f32 1e-05, %v1269_v15  ;;  %v1270_v19 = vmax.f32 %v1254_v36, 0.0  ;;  %v1255_v0 = vsub.f32 %v1223_v60, %v1239_v59 }
 0x456   : > { %v1351_v29 = vmul.f32 %v3023_v45, %v1328_v6  ;;  %v1329_v63 = vmul.f32 %v1931_v41, %v1281_v56  ;;  %v1377_v1 = vadd.f32 %v3028_v39, %v1354_v13  ;;  %v1392_v5 = vmax.f32 %v1376_v40, 0.0 }
 0x457   : > { %1934 = vrsqrt.f32 %v1301_v20  ;;  %v1302_v2 = vadd.f32 1e-05, %v1270_v19  ;;  %v1271_v44 = vmax.f32 %v1255_v0, 0.0 }
 0x458   : > { %v1374_v9 = vadd.f32 %v3028_v39, %v1351_v29  ;;  %v1352_v4 = vmul.f32 %v3023_v45, %v1329_v63  ;;  %v1393_v7 = vmax.f32 %v1377_v1, 0.0  ;;  %1408 = vst [vmem:[%s3045_s16 + $0x50] sm:$0xff] %v1392_v5 }
 0x459   : > { %1936 = vrsqrt.f32 %v1302_v2  ;;  %v1303_v25 = vadd.f32 1e-05, %v1271_v44 }
 0x45a   : > { %v1390_v33 = vmax.f32 %v1374_v9, 0.0  ;;  %v1375_v22 = vadd.f32 %v3028_v39, %v1352_v4  ;;  %1409 = vst [vmem:[%s3045_s16 + $0x58] sm:$0xff] %v1393_v7 }
 0x45b   : > { %1938 = vrsqrt.f32 %v1303_v25 }
 0x45c   : > { %1406 = vst [vmem:[%s3045_s16 + $0x40] sm:$0xff] %v1390_v33  ;;  %v1391_v28 = vmax.f32 %v1375_v22, 0.0 }
 0x45e   : > { %1407 = vst [vmem:[%s3045_s16 + $0x48] sm:$0xff] %v1391_v28 }
 0x45f   : > { %v1933_v32 = vpop.eup %1932 }
 0x460   : > { %v1332_v21 = vmul.f32 %v1933_v32, %v1284_v27 }
 0x461   : > { %v1935_v47 = vpop.eup %1934 }
 0x462   : > { %v1355_v51 = vmul.f32 %v3023_v45, %v1332_v21  ;;  %v1333_v16 = vmul.f32 %v1935_v47, %v1285_v43 }
 0x463   : > { %v1937_v48 = vpop.eup %1936 }
 0x464   : > { %v1378_v50 = vadd.f32 %v3028_v39, %v1355_v51  ;;  %v1356_v49 = vmul.f32 %v3023_v45, %v1333_v16  ;;  %v1334_v46 = vmul.f32 %v1937_v48, %v1286_v42 }
 0x465   : > { %v1939_v11 = vpop.eup %1938 }
 0x466   : > { %v1394_v52 = vmax.f32 %v1378_v50, 0.0  ;;  %v1379_v34 = vadd.f32 %v3028_v39, %v1356_v49  ;;  %v1357_v26 = vmul.f32 %v3023_v45, %v1334_v46  ;;  %v1335_v37 = vmul.f32 %v1939_v11, %v1287_v8 }
 0x468   : > { %1410 = vst [vmem:[%s3045_s16 + $0x60] sm:$0xff] %v1394_v52  ;;  %v1395_v3 = vmax.f32 %v1379_v34, 0.0  ;;  %v1380_v10 = vadd.f32 %v3028_v39, %v1357_v26  ;;  %v1358_v30 = vmul.f32 %v3023_v45, %v1335_v37 }
 0x46a   : > { %1411 = vst [vmem:[%s3045_s16 + $0x68] sm:$0xff] %v1395_v3  ;;  %v1396_v35 = vmax.f32 %v1380_v10, 0.0  ;;  %v1381_v12 = vadd.f32 %v3028_v39, %v1358_v30 }
 0x46c   : > { %1412 = vst [vmem:[%s3045_s16 + $0x70] sm:$0xff] %v1396_v35  ;;  %v1397_v53 = vmax.f32 %v1381_v12, 0.0 }
 0x46e   : > { %1413 = vst [vmem:[%s3045_s16 + $0x78] sm:$0xff] %v1397_v53 }
 0x46f   : > { %2207 = shalt.err (!%p2204_p10)
}
 0x470   : > { %s2208_s17 = scalar_lea.hbm %s3150_s25, 2048  ;;  %s2212_s22 = scalar_lea.hbm %s3232_s18, 4096 }
 0x471   : > { %p2209_p11 = scmp.ne.s32.totalorder %s3150_s25, %s2208_s17  ;;  %p2213_p7 = scmp.lt.u32.totalorder %s3150_s25, %s3232_s18 }
 0x472   : > { %p2214_p6 = scmp.lt.u32.totalorder %s2212_s22, %s2208_s17  ;;  %p2216_p12 = scmp.lt.u32.totalorder %s2208_s17, %s3150_s25 }
 0x473   : > { %p2210_p0 = pnand %p2209_p11, %p3233_p13 }
 0x474   : > { %p2215_p9 = por %p2214_p6, %p2213_p7 }
 0x475   : > { %p2211_p5 = pneg %p2210_p0 }
 0x476   : > { %p2217_p1 = por %p2216_p12, %p2215_p9 }
 0x478   : > { %p2218_p3 = pnand %p2217_p1, %p2211_p5 }
 0x47a   : > { %2221 = shalt.err (!%p2218_p3)
}
 0x47b   : > { %s2292_s15 = smov 128   ;;  %s2293_s26 = smov 8  }
 0x47c   : > { %1761 = dma.vmem_to_hbm [thread:$0]  (%p3233_p13), %s3152_s13, 2048, %s3150_s25, %s1415_s28, %s2292_s15, %s2292_s15, %s2293_s26  }
 0x47d PF: > { %s1443_s21 = sand.u32 1, %s2264_s30   ;;  %p3234_p2 = scmp.ne.s32.totalorder %s3221_s23, 0 }
 0x47e   : > { %p3235_p8 = scmp.ge.s32.totalorder %s2276_s12, 2  ;;  %s1444_s1 = scalar_lea.sflag [#allocation4], %s1443_s21 }
 0x480   : > { %p1793_p4 = pnand %p3235_p8, %p3234_p2 }
 0x482   : > { %2259 = dma.done.wait (!%p1793_p4), %s1444_s1, 2048  }
 0x483   : > { %2261 = vsyncadd (!%p1793_p4), %s1444_s1, 4294965248  ;;  %p26_p10 = scmp.ge.s32.totalorder %s2563_s19, 4   ;;  %s3236_s30 = smov %s2268_s10 }
 0x484   : > { %s3237_s10 = smov %s2272_s11  ;;  %s3238_s11 = smov %s2574_s24 }
 0x485   : > { %s3239_s12 = smov %s2563_s19  ;;  %28 = sbr.rel (!%p26_p10) target bundleno = 12 (0xc), region = 133 }
 0x48c   :  { %1449 = vsyncpa [#allocation3], 1 }
 0x48d   :  { %1451 = vsyncpa [#allocation3 + $0x1], 1 }
 0x48e   :  { %1452 = vsyncpa [#allocation6], 1 }
 0x48f   :  { %1453 = vsyncpa [#allocation9], 1 }
 0x490   :  { %1454 = vsyncpa [#allocation12], 1 }
 0x491   :  { %1455 = vsyncpa [#allocation15], 1 }
 0x492   :  { %1456 = vsyncpa [#allocation4], 1 }
 0x493   :  { %1458 = vsyncpa [#allocation4 + $0x1], 1 }

</bundles_post_ra>
